<compile_context>
chip_gen: v7x
topology: tpu7x:2x2x1
jax: 0.10.0
libtpu: 0.0.40
codegen_flags: <defaults>
</compile_context>

<pallas_src>
import numpy as np
import jax
import jax.numpy as jnp
from jax.experimental import pallas as pl
from jax.experimental.pallas import tpu as pltpu


# ---------------------------------------------------------------------------
# Static network dimensions (IMAGE_RESIZE=32, classic LeNet-5 trunk).
# ---------------------------------------------------------------------------
IMG = 32                  # input H = W
K = 5                     # conv kernel size
C1, C2 = 6, 16            # conv output channels
H1 = IMG - K + 1          # 28 : conv1 output H/W
P1 = H1 // 2              # 14 : pool1 output H/W
H2 = P1 - K + 1           # 10 : conv2 output H/W
P2 = H2 // 2              # 5  : pool2 output H/W
F1, F2, F3 = 120, 84, 2   # dense sizes

LANES = 128               # lane width of every packed operand
NPAD = 2 * LANES          # conv outputs carry even/odd column halves
ONE_X = IMG               # lane 32 of the padded input holds 1.0 (conv1 bias)
ONE_COL = 100             # constant-one lane carried through p1 / p2


# ---------------------------------------------------------------------------
# Fused kernel: conv1 -> pool+relu -> conv2 -> pool+relu -> fc1 -> fc2 -> fc3
# ---------------------------------------------------------------------------
def _lenet5_kernel(x_ref, t1_ref, t2_ref, w1_ref, w2_ref, w3_ref,
                   out_ref, p1_ref, p2_ref):
    Bt = x_ref.shape[0] // IMG           # images in this grid step (static)
    M1 = Bt * IMG - (K - 1)              # conv1 rows (incl. per-image tail junk)
    M2 = M1 - 1 - 2 * (K - 1)            # conv2 rows

    # conv1: one K-concatenated banded matmul; bias comes from x's ones lane.
    lhs1 = jnp.concatenate([x_ref[pl.ds(i, M1), :] for i in range(K)], axis=1)
    y1 = jnp.dot(lhs1, t1_ref[...], preferred_element_type=jnp.float32)

    # maxpool(2,2) + relu: column pairs were split into even/odd halves by the
    # weight packing, so the column reduction is a plain elementwise max;
    # row reduction is a shift-by-one max.  Valid p1 rows: b*32 + 2*h'.
    c1 = jnp.maximum(y1[:, :LANES], y1[:, LANES:])
    p1_ref[...] = jnp.maximum(jnp.maximum(c1[:M1 - 1, :], c1[1:, :]), 0.0)

    # conv2 over the compact-column / spread-row pool1 map, again as a single
    # K-concatenated dot (row shifts of 2 stay inside each 32-row image block).
    lhs2 = jnp.concatenate(
        [p1_ref[pl.ds(2 * i, M2), :] for i in range(K)], axis=1)
    y2 = jnp.dot(lhs2, t2_ref[...], preferred_element_type=jnp.float32)

    # maxpool(2,2) + relu.  Valid p2 rows: b*32 + 4*h3.
    c2 = jnp.maximum(y2[:, :LANES], y2[:, LANES:])
    p2_ref[...] = jnp.maximum(jnp.maximum(c2[:M2 - 2, :], c2[2:, :]), 0.0)

    # fc1 (+relu): gather the 5 valid pool2 rows of every image with strided
    # loads and contract them in ONE (Bt, 640) @ (640, 128) dot.
    lhsf = jnp.concatenate(
        [p2_ref[pl.ds(4 * r, Bt, stride=IMG), :] for r in range(P2)], axis=1)
    h = jnp.maximum(
        jnp.dot(lhsf, w1_ref[...], preferred_element_type=jnp.float32), 0.0)

    # fc2 (+relu), fc3 — biases folded via the constant-one lanes.
    h = jnp.maximum(
        jnp.dot(h, w2_ref[...], preferred_element_type=jnp.float32), 0.0)
    out_ref[0] = jnp.dot(h, w3_ref[...],
                         preferred_element_type=jnp.float32).astype(out_ref.dtype)


# ---------------------------------------------------------------------------
# Forward wrapper (one pallas_call; the whole batch is one matmul-M slab)
# ---------------------------------------------------------------------------
def lenet5_forward(params, x, *, grid_steps=1):
    """x: (B, 1, IMG, IMG) NCHW float32 -> (B, F3) logits.

    grid_steps=1: whole batch in a single invocation (best on 1-TC v5e/v6e).
    grid_steps=2: split the batch slab across v7x's two TensorCores.
    """
    B = x.shape[0]
    assert B % grid_steps == 0, "grid_steps must divide the batch"
    Bt = B // grid_steps
    M1 = Bt * IMG - (K - 1)
    M2 = M1 - 1 - 2 * (K - 1)

    # NCHW -> row-stacked (B*32, 128): pixel lanes 0..31, lane 32 carries the
    # constant 1.0 used for the folded conv1 bias, remaining lanes are zero.
    ximg = x.reshape(B * IMG, IMG).astype(jnp.float32)
    xpad = jnp.concatenate(
        [ximg,
         jnp.ones((B * IMG, 1), jnp.float32),
         jnp.zeros((B * IMG, LANES - IMG - 1), jnp.float32)], axis=1)

    weights = [params[k] for k in ("t1", "t2", "w1", "w2", "w3")]

    out = pl.pallas_call(
        _lenet5_kernel,
        out_shape=jax.ShapeDtypeStruct((grid_steps, Bt, LANES), jnp.float32),
        grid=(grid_steps,),
        in_specs=[pl.BlockSpec((Bt * IMG, LANES), lambda g: (g, 0))]
                 + [pl.BlockSpec(w.shape, lambda g: (0, 0)) for w in weights],
        out_specs=pl.BlockSpec((1, Bt, LANES), lambda g: (g, 0, 0)),
        scratch_shapes=[
            pltpu.VMEM((M1 - 1, LANES), jnp.float32),   # pool1 map (spread rows)
            pltpu.VMEM((M2 - 2, LANES), jnp.float32),   # pool2 map (spread rows)
        ],
        compiler_params=pltpu.CompilerParams(
            dimension_semantics=("parallel",)),
    )(xpad, *weights)
    return out.reshape(B, LANES)[:, :F3]


# ---------------------------------------------------------------------------
# Parameters: torch-layout raw init + one-time host-side packing
# ---------------------------------------------------------------------------
def init_raw_params(key):
    """Deterministic torch-like uniform init in PyTorch layouts."""
    ks = jax.random.split(key, 10)

    def u(k, shape, fan_in):
        bound = 1.0 / float(np.sqrt(fan_in))
        return jax.random.uniform(k, shape, jnp.float32, -bound, bound)

    nfeat = C2 * P2 * P2
    return {
        "conv1_w": u(ks[0], (C1, 1, K, K), 1 * K * K),
        "conv1_b": u(ks[1], (C1,), 1 * K * K),
        "conv2_w": u(ks[2], (C2, C1, K, K), C1 * K * K),
        "conv2_b": u(ks[3], (C2,), C1 * K * K),
        "fc1_w": u(ks[4], (F1, nfeat), nfeat),   # nn.Linear layout (out, in)
        "fc1_b": u(ks[5], (F1,), nfeat),
        "fc2_w": u(ks[6], (F2, F1), F1),
        "fc2_b": u(ks[7], (F2,), F1),
        "fc3_w": u(ks[8], (F3, F2), F2),
        "fc3_b": u(ks[9], (F3,), F2),
    }


def prepare_params(raw):
    """One-time packing of torch-layout weights into the lane-dense,
    bias-folded operands consumed by the fused kernel."""
    w1 = np.asarray(raw["conv1_w"], np.float32)
    b1 = np.asarray(raw["conv1_b"], np.float32)
    w2 = np.asarray(raw["conv2_w"], np.float32)
    b2 = np.asarray(raw["conv2_b"], np.float32)
    fw1 = np.asarray(raw["fc1_w"], np.float32)
    fb1 = np.asarray(raw["fc1_b"], np.float32)
    fw2 = np.asarray(raw["fc2_w"], np.float32)
    fb2 = np.asarray(raw["fc2_b"], np.float32)
    fw3 = np.asarray(raw["fc3_w"], np.float32)
    fb3 = np.asarray(raw["fc3_b"], np.float32)

    # conv1 band (K blocks of 128 rows), even/odd output-column split:
    #   y1[., c*14+wq]       = conv1[c, h, 2*wq]   + b1[c]
    #   y1[., 128+c*14+wq]   = conv1[c, h, 2*wq+1] + b1[c]
    t1 = np.zeros((K * LANES, NPAD), np.float32)
    for i in range(K):
        for c in range(C1):
            for wq in range(P1):
                for j in range(K):
                    t1[i * LANES + 2 * wq + j, c * P1 + wq] = w1[c, 0, i, j]
                    t1[i * LANES + 2 * wq + 1 + j,
                       LANES + c * P1 + wq] = w1[c, 0, i, j]
    for c in range(C1):
        t1[ONE_X, c * P1:(c + 1) * P1] = b1[c]
        t1[ONE_X, LANES + c * P1:LANES + (c + 1) * P1] = b1[c]
    t1[ONE_X, ONE_COL] = 1.0                 # constant-one lane for p1

    # conv2 band over pool1's compact columns (c*14 + w'), even/odd split:
    t2 = np.zeros((K * LANES, NPAD), np.float32)
    for i in range(K):
        for o in range(C2):
            for c in range(C1):
                for wq in range(P2):
                    for j in range(K):
                        t2[i * LANES + c * P1 + 2 * wq + j,
                           o * P2 + wq] = w2[o, c, i, j]
                        t2[i * LANES + c * P1 + 2 * wq + 1 + j,
                           LANES + o * P2 + wq] = w2[o, c, i, j]
    for o in range(C2):
        t2[ONE_COL, o * P2:(o + 1) * P2] = b2[o]
        t2[ONE_COL, LANES + o * P2:LANES + (o + 1) * P2] = b2[o]
    t2[ONE_COL, ONE_COL] = 1.0               # constant-one lane for p2

    # fc1: PyTorch NCHW flatten order (o, h3, w3) folded into the (640, 128)
    # block; bias via p2's constant-one lane; lane F1 regenerates a 1 for fc2.
    wf1 = np.zeros((P2 * LANES, LANES), np.float32)
    for r in range(P2):
        for o in range(C2):
            for wq in range(P2):
                wf1[r * LANES + o * P2 + wq, :F1] = \
                    fw1[:, o * P2 * P2 + r * P2 + wq]
    wf1[ONE_COL, :F1] = fb1
    wf1[ONE_COL, F1] = 1.0

    wf2 = np.zeros((LANES, LANES), np.float32)
    wf2[:F1, :F2] = fw2.T
    wf2[F1, :F2] = fb2
    wf2[F1, F2] = 1.0                        # ones lane for the fc3 bias

    wf3 = np.zeros((LANES, LANES), np.float32)
    wf3[:F2, :F3] = fw3.T
    wf3[F2, :F3] = fb3

    packed = dict(t1=t1, t2=t2, w1=wf1, w2=wf2, w3=wf3)
    return {k: jnp.asarray(v) for k, v in packed.items()}


# ---------------------------------------------------------------------------
# Pure-JAX reference of the same PyTorch module (sanity check only)
# ---------------------------------------------------------------------------
def lenet5_reference(raw, x):
    hp = jax.lax.Precision.HIGHEST

    def conv(z, w, b):
        y = jax.lax.conv_general_dilated(
            z, w, window_strides=(1, 1), padding="VALID",
            dimension_numbers=("NCHW", "OIHW", "NCHW"), precision=hp)
        return y + b[None, :, None, None]

    def pool_relu(z):
        z = jax.lax.reduce_window(z, -jnp.inf, jax.lax.max,
                                  (1, 1, 2, 2), (1, 1, 2, 2), "VALID")
        return jnp.maximum(z, 0.0)

    y = pool_relu(conv(x, raw["conv1_w"], raw["conv1_b"]))
    y = pool_relu(conv(y, raw["conv2_w"], raw["conv2_b"]))
    f = y.reshape(x.shape[0], -1)
    h = jnp.maximum(jnp.dot(f, raw["fc1_w"].T, precision=hp) + raw["fc1_b"], 0.0)
    h = jnp.maximum(jnp.dot(h, raw["fc2_w"].T, precision=hp) + raw["fc2_b"], 0.0)
    return jnp.dot(h, raw["fc3_w"].T, precision=hp) + raw["fc3_b"]


# ---------------------------------------------------------------------------
if __name__ == "__main__":
    key = jax.random.PRNGKey(0)
    pkey, xkey = jax.random.split(key)
    raw = init_raw_params(pkey)
    params = prepare_params(raw)          # one-time packing, outside the jit

    B = 2
    x = jax.random.normal(xkey, (B, 1, IMG, IMG), jnp.float32)

    fwd = jax.jit(lenet5_forward, static_argnames=("grid_steps",))
    out = jax.block_until_ready(fwd(params, x))   # grid_steps=1: v5e/v6e path
    assert out.shape == (B, F3), out.shape

    ref = jax.block_until_ready(jax.jit(lenet5_reference)(raw, x))
    if not np.allclose(np.asarray(out), np.asarray(ref), rtol=5e-3, atol=5e-3):
        raise AssertionError("fused Pallas LeNet-5 deviates from XLA reference")

    print("KERNEL_OK")
</pallas_src>

<mosaic_0001>
module attributes {stable_mosaic.version = 11 : i64} {
  func.func @_lenet5_kernel(%arg0: i32, %arg1: memref<64x128xf32, #tpu.memory_space<vmem>>, %arg2: memref<640x256xf32, #tpu.memory_space<vmem>>, %arg3: memref<640x256xf32, #tpu.memory_space<vmem>>, %arg4: memref<640x128xf32, #tpu.memory_space<vmem>>, %arg5: memref<128x128xf32, #tpu.memory_space<vmem>>, %arg6: memref<128x128xf32, #tpu.memory_space<vmem>>, %arg7: memref<1x2x128xf32, #tpu.memory_space<vmem>>, %arg8: memref<59x128xf32, #tpu.memory_space<vmem>>, %arg9: memref<49x128xf32, #tpu.memory_space<vmem>>) attributes {dimension_semantics = [#tpu.dimension_semantics<parallel>], iteration_bounds = array<i64: 1>, scalar_prefetch = 0 : i64, scratch_operands = 2 : i64, tpu.core_type = #tpu.core_type<tc>, window_params = [{transform_indices = @transform_0, window_bounds = array<i64: 64, 128>}, {pipeline_mode = #tpu.pipeline_mode<synchronous>, transform_indices = @transform_1, window_bounds = array<i64: 640, 256>}, {pipeline_mode = #tpu.pipeline_mode<synchronous>, transform_indices = @transform_2, window_bounds = array<i64: 640, 256>}, {pipeline_mode = #tpu.pipeline_mode<synchronous>, transform_indices = @transform_3, window_bounds = array<i64: 640, 128>}, {pipeline_mode = #tpu.pipeline_mode<synchronous>, transform_indices = @transform_4, window_bounds = array<i64: 128, 128>}, {pipeline_mode = #tpu.pipeline_mode<synchronous>, transform_indices = @transform_5, window_bounds = array<i64: 128, 128>}, {transform_indices = @transform_6, window_bounds = array<i64: 1, 2, 128>}]} {
    %c0 = arith.constant 0 : index
    %c0_0 = arith.constant 0 : index
    %0 = vector.load %arg1[%c0, %c0_0] : memref<64x128xf32, #tpu.memory_space<vmem>>, vector<60x128xf32>
    %c1 = arith.constant 1 : index
    %c0_1 = arith.constant 0 : index
    %1 = vector.load %arg1[%c1, %c0_1] : memref<64x128xf32, #tpu.memory_space<vmem>>, vector<60x128xf32>
    %c2 = arith.constant 2 : index
    %c0_2 = arith.constant 0 : index
    %2 = vector.load %arg1[%c2, %c0_2] : memref<64x128xf32, #tpu.memory_space<vmem>>, vector<60x128xf32>
    %c3 = arith.constant 3 : index
    %c0_3 = arith.constant 0 : index
    %3 = vector.load %arg1[%c3, %c0_3] : memref<64x128xf32, #tpu.memory_space<vmem>>, vector<60x128xf32>
    %c4 = arith.constant 4 : index
    %c0_4 = arith.constant 0 : index
    %4 = vector.load %arg1[%c4, %c0_4] : memref<64x128xf32, #tpu.memory_space<vmem>>, vector<60x128xf32>
    %5 = tpu.concatenate %0, %1, %2, %3, %4 in 1 : vector<60x128xf32>, vector<60x128xf32>, vector<60x128xf32>, vector<60x128xf32>, vector<60x128xf32> -> vector<60x640xf32>
    %c0_5 = arith.constant 0 : index
    %c0_6 = arith.constant 0 : index
    %6 = vector.load %arg2[%c0_5, %c0_6] : memref<640x256xf32, #tpu.memory_space<vmem>>, vector<640x256xf32>
    %cst = arith.constant dense<0.000000e+00> : vector<60x256xf32>
    %7 = tpu.matmul %5, %6, %cst {dimension_numbers = #tpu.dot_dimension_numbers<[1], [0], [0], [1], [0, 0, 1, 1], [], []>} : vector<60x640xf32>, vector<640x256xf32>, vector<60x256xf32> -> vector<60x256xf32>
    %8 = vector.extract_strided_slice %7 {offsets = [0, 0], sizes = [60, 128], strides = [1, 1]} : vector<60x256xf32> to vector<60x128xf32>
    %9 = vector.extract_strided_slice %7 {offsets = [0, 128], sizes = [60, 128], strides = [1, 1]} : vector<60x256xf32> to vector<60x128xf32>
    %10 = arith.maximumf %8, %9 : vector<60x128xf32>
    %11 = vector.extract_strided_slice %10 {offsets = [0, 0], sizes = [59, 128], strides = [1, 1]} : vector<60x128xf32> to vector<59x128xf32>
    %12 = vector.extract_strided_slice %10 {offsets = [1, 0], sizes = [59, 128], strides = [1, 1]} : vector<60x128xf32> to vector<59x128xf32>
    %13 = arith.maximumf %11, %12 : vector<59x128xf32>
    %cst_7 = arith.constant 0.000000e+00 : f32
    %14 = vector.broadcast %cst_7 : f32 to vector<59x128xf32>
    %15 = arith.maximumf %13, %14 : vector<59x128xf32>
    %c0_8 = arith.constant 0 : index
    %c0_9 = arith.constant 0 : index
    %16 = vector.load %arg8[%c0_8, %c0_9] : memref<59x128xf32, #tpu.memory_space<vmem>>, vector<59x128xf32>
    tpu.vector_store %arg8[%c0_8, %c0_9], %15 {strides = array<i32>} : memref<59x128xf32, #tpu.memory_space<vmem>>, vector<59x128xf32>,
    %c0_10 = arith.constant 0 : index
    %c0_11 = arith.constant 0 : index
    %17 = vector.load %arg8[%c0_10, %c0_11] : memref<59x128xf32, #tpu.memory_space<vmem>>, vector<51x128xf32>
    %c2_12 = arith.constant 2 : index
    %c0_13 = arith.constant 0 : index
    %18 = vector.load %arg8[%c2_12, %c0_13] : memref<59x128xf32, #tpu.memory_space<vmem>>, vector<51x128xf32>
    %c4_14 = arith.constant 4 : index
    %c0_15 = arith.constant 0 : index
    %19 = vector.load %arg8[%c4_14, %c0_15] : memref<59x128xf32, #tpu.memory_space<vmem>>, vector<51x128xf32>
    %c6 = arith.constant 6 : index
    %c0_16 = arith.constant 0 : index
    %20 = vector.load %arg8[%c6, %c0_16] : memref<59x128xf32, #tpu.memory_space<vmem>>, vector<51x128xf32>
    %c8 = arith.constant 8 : index
    %c0_17 = arith.constant 0 : index
    %21 = vector.load %arg8[%c8, %c0_17] : memref<59x128xf32, #tpu.memory_space<vmem>>, vector<51x128xf32>
    %22 = tpu.concatenate %17, %18, %19, %20, %21 in 1 : vector<51x128xf32>, vector<51x128xf32>, vector<51x128xf32>, vector<51x128xf32>, vector<51x128xf32> -> vector<51x640xf32>
    %c0_18 = arith.constant 0 : index
    %c0_19 = arith.constant 0 : index
    %23 = vector.load %arg3[%c0_18, %c0_19] : memref<640x256xf32, #tpu.memory_space<vmem>>, vector<640x256xf32>
    %cst_20 = arith.constant dense<0.000000e+00> : vector<51x256xf32>
    %24 = tpu.matmul %22, %23, %cst_20 {dimension_numbers = #tpu.dot_dimension_numbers<[1], [0], [0], [1], [0, 0, 1, 1], [], []>} : vector<51x640xf32>, vector<640x256xf32>, vector<51x256xf32> -> vector<51x256xf32>
    %25 = vector.extract_strided_slice %24 {offsets = [0, 0], sizes = [51, 128], strides = [1, 1]} : vector<51x256xf32> to vector<51x128xf32>
    %26 = vector.extract_strided_slice %24 {offsets = [0, 128], sizes = [51, 128], strides = [1, 1]} : vector<51x256xf32> to vector<51x128xf32>
    %27 = arith.maximumf %25, %26 : vector<51x128xf32>
    %28 = vector.extract_strided_slice %27 {offsets = [0, 0], sizes = [49, 128], strides = [1, 1]} : vector<51x128xf32> to vector<49x128xf32>
    %29 = vector.extract_strided_slice %27 {offsets = [2, 0], sizes = [49, 128], strides = [1, 1]} : vector<51x128xf32> to vector<49x128xf32>
    %30 = arith.maximumf %28, %29 : vector<49x128xf32>
    %cst_21 = arith.constant 0.000000e+00 : f32
    %31 = vector.broadcast %cst_21 : f32 to vector<49x128xf32>
    %32 = arith.maximumf %30, %31 : vector<49x128xf32>
    %c0_22 = arith.constant 0 : index
    %c0_23 = arith.constant 0 : index
    %33 = vector.load %arg9[%c0_22, %c0_23] : memref<49x128xf32, #tpu.memory_space<vmem>>, vector<49x128xf32>
    tpu.vector_store %arg9[%c0_22, %c0_23], %32 {strides = array<i32>} : memref<49x128xf32, #tpu.memory_space<vmem>>, vector<49x128xf32>,
    %c0_24 = arith.constant 0 : index
    %c0_25 = arith.constant 0 : index
    %34 = tpu.strided_load %arg9[%c0_24, %c0_25] {strides = array<i32: 32, 1>} : memref<49x128xf32, #tpu.memory_space<vmem>>, vector<2x128xf32>
    %c4_26 = arith.constant 4 : index
    %c0_27 = arith.constant 0 : index
    %35 = tpu.strided_load %arg9[%c4_26, %c0_27] {strides = array<i32: 32, 1>} : memref<49x128xf32, #tpu.memory_space<vmem>>, vector<2x128xf32>
    %c8_28 = arith.constant 8 : index
    %c0_29 = arith.constant 0 : index
    %36 = tpu.strided_load %arg9[%c8_28, %c0_29] {strides = array<i32: 32, 1>} : memref<49x128xf32, #tpu.memory_space<vmem>>, vector<2x128xf32>
    %c12 = arith.constant 12 : index
    %c0_30 = arith.constant 0 : index
    %37 = tpu.strided_load %arg9[%c12, %c0_30] {strides = array<i32: 32, 1>} : memref<49x128xf32, #tpu.memory_space<vmem>>, vector<2x128xf32>
    %c16 = arith.constant 16 : index
    %c0_31 = arith.constant 0 : index
    %38 = tpu.strided_load %arg9[%c16, %c0_31] {strides = array<i32: 32, 1>} : memref<49x128xf32, #tpu.memory_space<vmem>>, vector<2x128xf32>
    %39 = tpu.concatenate %34, %35, %36, %37, %38 in 1 : vector<2x128xf32>, vector<2x128xf32>, vector<2x128xf32>, vector<2x128xf32>, vector<2x128xf32> -> vector<2x640xf32>
    %c0_32 = arith.constant 0 : index
    %c0_33 = arith.constant 0 : index
    %40 = vector.load %arg4[%c0_32, %c0_33] : memref<640x128xf32, #tpu.memory_space<vmem>>, vector<640x128xf32>
    %cst_34 = arith.constant dense<0.000000e+00> : vector<2x128xf32>
    %41 = tpu.matmul %39, %40, %cst_34 {dimension_numbers = #tpu.dot_dimension_numbers<[1], [0], [0], [1], [0, 0, 1, 1], [], []>} : vector<2x640xf32>, vector<640x128xf32>, vector<2x128xf32> -> vector<2x128xf32>
    %cst_35 = arith.constant 0.000000e+00 : f32
    %42 = vector.broadcast %cst_35 : f32 to vector<2x128xf32>
    %43 = arith.maximumf %41, %42 : vector<2x128xf32>
    %c0_36 = arith.constant 0 : index
    %c0_37 = arith.constant 0 : index
    %44 = vector.load %arg5[%c0_36, %c0_37] : memref<128x128xf32, #tpu.memory_space<vmem>>, vector<128x128xf32>
    %cst_38 = arith.constant dense<0.000000e+00> : vector<2x128xf32>
    %45 = tpu.matmul %43, %44, %cst_38 {dimension_numbers = #tpu.dot_dimension_numbers<[1], [0], [0], [1], [0, 0, 1, 1], [], []>} : vector<2x128xf32>, vector<128x128xf32>, vector<2x128xf32> -> vector<2x128xf32>
    %cst_39 = arith.constant 0.000000e+00 : f32
    %46 = vector.broadcast %cst_39 : f32 to vector<2x128xf32>
    %47 = arith.maximumf %45, %46 : vector<2x128xf32>
    %c0_40 = arith.constant 0 : index
    %c0_41 = arith.constant 0 : index
    %48 = vector.load %arg6[%c0_40, %c0_41] : memref<128x128xf32, #tpu.memory_space<vmem>>, vector<128x128xf32>
    %cst_42 = arith.constant dense<0.000000e+00> : vector<2x128xf32>
    %49 = tpu.matmul %47, %48, %cst_42 {dimension_numbers = #tpu.dot_dimension_numbers<[1], [0], [0], [1], [0, 0, 1, 1], [], []>} : vector<2x128xf32>, vector<128x128xf32>, vector<2x128xf32> -> vector<2x128xf32>
    %c0_43 = arith.constant 0 : index
    %c0_44 = arith.constant 0 : index
    %c0_45 = arith.constant 0 : index
    %50 = vector.load %arg7[%c0_43, %c0_44, %c0_45] : memref<1x2x128xf32, #tpu.memory_space<vmem>>, vector<1x2x128xf32>
    %51 = vector.shape_cast %50 : vector<1x2x128xf32> to vector<2x128xf32>
    %52 = vector.shape_cast %49 : vector<2x128xf32> to vector<1x2x128xf32>
    tpu.vector_store %arg7[%c0_43, %c0_44, %c0_45], %52 {strides = array<i32>} : memref<1x2x128xf32, #tpu.memory_space<vmem>>, vector<1x2x128xf32>,
    return
  }
  func.func @transform_0(%arg0: i32) -> (i32, i32) {
    %c0_i32 = arith.constant 0 : i32
    %c0_i32_0 = arith.constant 0 : i32
    return %arg0, %c0_i32 : i32, i32
  }
  func.func @transform_1(%arg0: i32) -> (i32, i32) {
    %c0_i32 = arith.constant 0 : i32
    %c0_i32_0 = arith.constant 0 : i32
    %c0_i32_1 = arith.constant 0 : i32
    return %c0_i32, %c0_i32_0 : i32, i32
  }
  func.func @transform_2(%arg0: i32) -> (i32, i32) {
    %c0_i32 = arith.constant 0 : i32
    %c0_i32_0 = arith.constant 0 : i32
    %c0_i32_1 = arith.constant 0 : i32
    return %c0_i32, %c0_i32_0 : i32, i32
  }
  func.func @transform_3(%arg0: i32) -> (i32, i32) {
    %c0_i32 = arith.constant 0 : i32
    %c0_i32_0 = arith.constant 0 : i32
    %c0_i32_1 = arith.constant 0 : i32
    return %c0_i32, %c0_i32_0 : i32, i32
  }
  func.func @transform_4(%arg0: i32) -> (i32, i32) {
    %c0_i32 = arith.constant 0 : i32
    %c0_i32_0 = arith.constant 0 : i32
    %c0_i32_1 = arith.constant 0 : i32
    return %c0_i32, %c0_i32_0 : i32, i32
  }
  func.func @transform_5(%arg0: i32) -> (i32, i32) {
    %c0_i32 = arith.constant 0 : i32
    %c0_i32_0 = arith.constant 0 : i32
    %c0_i32_1 = arith.constant 0 : i32
    return %c0_i32, %c0_i32_0 : i32, i32
  }
  func.func @transform_6(%arg0: i32) -> (i32, i32, i32) {
    %c0_i32 = arith.constant 0 : i32
    %c0_i32_0 = arith.constant 0 : i32
    %c0_i32_1 = arith.constant 0 : i32
    return %arg0, %c0_i32, %c0_i32_0 : i32, i32, i32
  }
}

</mosaic_0001>

<bundles_post_ra>
// kernel: lenet5_forward.1
= control target key start
LH: loop header
LB: loop body
LE: loop exit
PB: predicated region body
PF: predicated region fallthrough
CT: control target
= control target key end

     0   :  { %11 = vsyncpa [#allocation5], 0  ;;  %s2995_s0 = inlined_call_operand.vmem [shape: f32[64,128], index: 0, kind: input, shape index: {}]   ;;  %s2996_s1 = inlined_call_operand.hbm [shape: f32[640,256], index: 1, kind: input, shape index: {}]   ;;  %s2997_s2 = inlined_call_operand.hbm [shape: f32[640,256], index: 2, kind: input, shape index: {}]   ;;  %s2998_s3 = inlined_call_operand.hbm [shape: f32[640,128], index: 3, kind: input, shape index: {}]   ;;  %s2999_s4 = inlined_call_operand.vmem [shape: f32[128,128], index: 4, kind: input, shape index: {}]   ;;  %s3000_s5 = inlined_call_operand.hbm [shape: f32[128,128], index: 5, kind: input, shape index: {}]   ;;  %s3001_s6 = inlined_call_operand.hbm [shape: f32[1,2,128], index: 6, kind: output, shape index: {}]  }
   0x1   :  { %12 = vsyncpa [#allocation8], 0 }
   0x2   :  { %13 = vsyncpa [#allocation11], 0 }
   0x3   :  { %14 = vsyncpa [#allocation6], 0  ;;  %s2627_s21 = smov [#allocation7]   ;;  %s2628_s23 = smov [#allocation4]  }
   0x4   :  { %s34_s22 = sshll.u32 %s2627_s21, 4  ;;  %s22_s24 = sshll.u32 %s2628_s23, 4  ;;  %s35_s22 = int_to_ptr.vmem [resolvable:$true] %s34_s22  ;;  %s2674_s24 = int_to_ptr.vmem [resolvable:$true] %s22_s24 }
   0x5   :  { %s2509_s27 = scalar_lea.hbm %s2997_s2, 20480 }
   0x6   :  { %p2510_p0 = scmp.ne.s32.totalorder %s2997_s2, %s2509_s27  ;;  %p2513_p1 = scmp.lt.u32.totalorder %s2509_s27, %s2997_s2 }
   0x8   :  { %p2515_p2 = pnand %p2513_p1, %p2510_p0 }
   0xa   :  { %2518 = shalt.err (!%p2515_p2)
}
   0xb   :  { %s2519_s8 = scalar_lea.vmem %s35_s22, 20480  ;;  %p2524_p4 = scmp.lt.s32.totalorder %s35_s22, %s35_s22 }
   0xc   :  { %p2520_p3 = scmp.ne.s32.totalorder %s35_s22, %s2519_s8  ;;  %p2525_p5 = scmp.lt.s32.totalorder %s2519_s8, %s2519_s8 }
   0xe   :  { %p2526_p6 = por %p2525_p5, %p2524_p4 }
  0x10   :  { %p2527_p7 = pnand %p2526_p6, %p2520_p3 }
  0x12   :  { %2530 = shalt.err (!%p2527_p7)
}
  0x13   :  { %s2629_s9 = smov 256   ;;  %s2630_s10 = smov 16  }
  0x14   :  { %40 = dma.hbm_to_vmem [thread:$0]  %s2997_s2, 20480, %s35_s22, [#allocation8], %s2629_s9, %s2629_s9, %s2630_s10  }
  0x15   :  { %s2531_s15 = scalar_lea.hbm %s2996_s1, 20480 }
  0x16   :  { %p2532_p8 = scmp.ne.s32.totalorder %s2996_s1, %s2531_s15  ;;  %p2535_p9 = scmp.lt.u32.totalorder %s2531_s15, %s2996_s1 }
  0x18   :  { %p2537_p10 = pnand %p2535_p9, %p2532_p8 }
  0x1a   :  { %2540 = shalt.err (!%p2537_p10)
}
  0x1b   :  { %s2541_s20 = scalar_lea.vmem %s2674_s24, 20480  ;;  %p2546_p12 = scmp.lt.s32.totalorder %s2674_s24, %s2674_s24 }
  0x1c   :  { %p2542_p11 = scmp.ne.s32.totalorder %s2674_s24, %s2541_s20  ;;  %p2547_p13 = scmp.lt.s32.totalorder %s2541_s20, %s2541_s20 }
  0x1e   :  { %p2548_p0 = por %p2547_p13, %p2546_p12 }
  0x20   :  { %p2549_p1 = pnand %p2548_p0, %p2542_p11 }
  0x22   :  { %2552 = shalt.err (!%p2549_p1)
}
  0x23   :  { %28 = dma.hbm_to_vmem [thread:$0]  %s2996_s1, 20480, %s2674_s24, [#allocation5], %s2629_s9, %s2629_s9, %s2630_s10  }
  0x24   :  { %s2631_s22 = smov [#allocation9]   ;;  %s2553_s27 = scalar_lea.hbm %s2998_s3, 10240 }
  0x25   :  { %s46_s23 = sshll.u32 %s2631_s22, 4  ;;  %p2554_p2 = scmp.ne.s32.totalorder %s2998_s3, %s2553_s27  ;;  %s47_s23 = int_to_ptr.vmem [resolvable:$true] %s46_s23 }
  0x26   :  { %p2557_p3 = scmp.lt.u32.totalorder %s2553_s27, %s2998_s3 }
  0x28   :  { %p2559_p4 = pnand %p2557_p3, %p2554_p2 }
  0x2a   :  { %2562 = shalt.err (!%p2559_p4)
}
  0x2b   :  { %s2563_s8 = scalar_lea.vmem %s47_s23, 10240  ;;  %p2568_p6 = scmp.lt.s32.totalorder %s47_s23, %s47_s23 }
  0x2c   :  { %p2564_p5 = scmp.ne.s32.totalorder %s47_s23, %s2563_s8  ;;  %p2569_p7 = scmp.lt.s32.totalorder %s2563_s8, %s2563_s8 }
  0x2e   :  { %p2570_p8 = por %p2569_p7, %p2568_p6 }
  0x30   :  { %p2571_p9 = pnand %p2570_p8, %p2564_p5 }
  0x32   :  { %2574 = shalt.err (!%p2571_p9)
}
  0x33   :  { %s2632_s1 = smov 128   ;;  %s2633_s24 = smov 8  }
  0x34   :  { %52 = dma.hbm_to_vmem [thread:$0]  %s2998_s3, 10240, %s47_s23, [#allocation8], %s2632_s1, %s2632_s1, %s2633_s24  }
  0x35   :  { %s2634_s11 = smov [#allocation10]   ;;  %s2575_s15 = scalar_lea.hbm %s3000_s5, 2048 }
  0x36   :  { %s60_s12 = sshll.u32 %s2634_s11, 4  ;;  %p2576_p10 = scmp.ne.s32.totalorder %s3000_s5, %s2575_s15  ;;  %s61_s12 = int_to_ptr.vmem [resolvable:$true] %s60_s12 }
  0x37   :  { %p2579_p11 = scmp.lt.u32.totalorder %s2575_s15, %s3000_s5 }
  0x39   :  { %p2581_p12 = pnand %p2579_p11, %p2576_p10 }
  0x3b   :  { %2584 = shalt.err (!%p2581_p12)
}
  0x3c   :  { %s2585_s20 = scalar_lea.vmem %s61_s12, 2048  ;;  %p2590_p0 = scmp.lt.s32.totalorder %s61_s12, %s61_s12 }
  0x3d   :  { %p2586_p13 = scmp.ne.s32.totalorder %s61_s12, %s2585_s20  ;;  %p2591_p1 = scmp.lt.s32.totalorder %s2585_s20, %s2585_s20 }
  0x3f   :  { %p2592_p2 = por %p2591_p1, %p2590_p0 }
  0x41   :  { %p2593_p3 = pnand %p2592_p2, %p2586_p13 }
  0x43   :  { %2596 = shalt.err (!%p2593_p3)
}
  0x44   :  { %66 = dma.hbm_to_vmem [thread:$0]  %s3000_s5, 2048, %s61_s12, [#allocation11], %s2632_s1, %s2632_s1, %s2633_s24  }
  0x45   :  { %2619 = dma.done.wait [#allocation5], 20480  }
  0x46   :  { %2620 = vsyncadd [#allocation5], 4294946816 }
  0x47   :  { %2621 = dma.done.wait [#allocation8], 30720  }
  0x48   :  { %2622 = vsyncadd [#allocation8], 4294936576 }
  0x49   :  { %2623 = dma.done.wait [#allocation11], 2048  }
  0x4a   :  { %2624 = vsyncadd [#allocation11], 4294965248  ;;  %v120_v0 = vld [vmem:[#allocation4 + $0x8] sm:$0xff]  ;;  %v122_v1 = vld [vmem:[#allocation4 + $0x18] sm:$0xff]  ;;  %vm634_vm0 = vcmask 1046528   ;;  %vm1212_vm1 = vcmask 1045504  }
  0x4b   :  { %v119_v2 = vld [vmem:[#allocation4] sm:$0xff]  ;;  %v1981_v3 = vpack.c.bf16 %v122_v1, %v120_v0  ;;  %v121_v4 = vld [vmem:[#allocation4 + $0x10] sm:$0xff]  ;;  %v124_v5 = vld [vmem:[#allocation4 + $0x28] sm:$0xff]  ;;  %vm2637_vm2 = vmmov 0  }
  0x4c   :  { %v126_v6 = vld [vmem:[#allocation4 + $0x38] sm:$0xff]  ;;  %v1983_v7 = vpack.c.bf16 %v121_v4, %v119_v2  ;;  %v123_v9 = vld [vmem:[#allocation4 + $0x20] sm:$0xff]  ;;  %v125_v10 = vld [vmem:[#allocation4 + $0x30] sm:$0xff] }
  0x4d   :  { %v1985_v8 = vpack.c.bf16 %v126_v6, %v124_v5  ;;  %v128_v11 = vld [vmem:[#allocation4 + $0x48] sm:$0xff]  ;;  %1982 = vmatprep.subr.bf16.mxu0 %v1981_v3  ;;  %v130_v12 = vld [vmem:[#allocation4 + $0x58] sm:$0xff]  ;;  %v1987_v13 = vpack.c.bf16 %v125_v10, %v123_v9  ;;  %v127_v15 = vld [vmem:[#allocation4 + $0x40] sm:$0xff] }
  0x4e   :  { %1984 = vmatpush1.bf16.msra.mxu0 %v1983_v7  ;;  %v1989_v14 = vpack.c.bf16 %v130_v12, %v128_v11  ;;  %v129_v16 = vld [vmem:[#allocation4 + $0x50] sm:$0xff]  ;;  %v132_v17 = vld [vmem:[#allocation4 + $0x68] sm:$0xff]  ;;  %v134_v18 = vld [vmem:[#allocation4 + $0x78] sm:$0xff] }
  0x4f   :  { %1986 = vmatprep.subr.bf16.mxu0 %v1985_v8  ;;  %v1991_v19 = vpack.c.bf16 %v129_v16, %v127_v15  ;;  %v1993_v20 = vpack.c.bf16 %v134_v18, %v132_v17  ;;  %v131_v21 = vld [vmem:[#allocation4 + $0x60] sm:$0xff]  ;;  %v133_v22 = vld [vmem:[#allocation4 + $0x70] sm:$0xff]  ;;  %v136_v23 = vld [vmem:[#allocation4 + $0x88] sm:$0xff] }
  0x50   :  { %v138_v24 = vld [vmem:[#allocation4 + $0x98] sm:$0xff]  ;;  %v1995_v25 = vpack.c.bf16 %v133_v22, %v131_v21  ;;  %v135_v27 = vld [vmem:[#allocation4 + $0x80] sm:$0xff]  ;;  %v137_v28 = vld [vmem:[#allocation4 + $0x90] sm:$0xff] }
  0x51   :  { %v1997_v26 = vpack.c.bf16 %v138_v24, %v136_v23  ;;  %v140_v29 = vld [vmem:[#allocation4 + $0xa8] sm:$0xff]  ;;  %v142_v30 = vld [vmem:[#allocation4 + $0xb8] sm:$0xff]  ;;  %v1999_v31 = vpack.c.bf16 %v137_v28, %v135_v27  ;;  %v139_v33 = vld [vmem:[#allocation4 + $0xa0] sm:$0xff] }
  0x52   :  { %1988 = vmatpush1.bf16.msra.mxu0 %v1987_v13  ;;  %v2001_v32 = vpack.c.bf16 %v142_v30, %v140_v29  ;;  %v141_v34 = vld [vmem:[#allocation4 + $0xb0] sm:$0xff]  ;;  %v144_v35 = vld [vmem:[#allocation4 + $0xc8] sm:$0xff]  ;;  %v146_v36 = vld [vmem:[#allocation4 + $0xd8] sm:$0xff] }
  0x53   :  { %1990 = vmatprep.subr.bf16.mxu0 %v1989_v14  ;;  %v2003_v37 = vpack.c.bf16 %v141_v34, %v139_v33  ;;  %v2005_v38 = vpack.c.bf16 %v146_v36, %v144_v35  ;;  %v143_v39 = vld [vmem:[#allocation4 + $0xc0] sm:$0xff]  ;;  %v145_v40 = vld [vmem:[#allocation4 + $0xd0] sm:$0xff]  ;;  %v148_v42 = vld [vmem:[#allocation4 + $0xe8] sm:$0xff] }
  0x54   :  { %v87_v41 = vld [vmem:[%s2995_s0 + $0x1] sm:$0xff]  ;;  %v150_v43 = vld [vmem:[#allocation4 + $0xf8] sm:$0xff]  ;;  %v2007_v44 = vpack.c.bf16 %v145_v40, %v143_v39  ;;  %v147_v46 = vld [vmem:[#allocation4 + $0xe0] sm:$0xff] }
  0x55   :  { %343 = vmatprep.mubr.f32.mxu0 %v87_v41  ;;  %v2009_v45 = vpack.c.bf16 %v150_v43, %v148_v42  ;;  %v149_v47 = vld [vmem:[#allocation4 + $0xf0] sm:$0xff]  ;;  %v152_v48 = vld [vmem:[#allocation4 + $0x108] sm:$0xff]  ;;  %v154_v49 = vld [vmem:[#allocation4 + $0x118] sm:$0xff] }
  0x56   :  { %1992 = vmatpush1.bf16.msra.mxu0 %v1991_v19  ;;  %v2011_v50 = vpack.c.bf16 %v149_v47, %v147_v46  ;;  %v2013_v51 = vpack.c.bf16 %v154_v49, %v152_v48  ;;  %v151_v52 = vld [vmem:[#allocation4 + $0x100] sm:$0xff]  ;;  %v153_v53 = vld [vmem:[#allocation4 + $0x110] sm:$0xff]  ;;  %v156_v54 = vld [vmem:[#allocation4 + $0x128] sm:$0xff] }
  0x57   :  { %1994 = vmatprep.subr.bf16.mxu0 %v1993_v20  ;;  %v158_v55 = vld [vmem:[#allocation4 + $0x138] sm:$0xff]  ;;  %v2015_v56 = vpack.c.bf16 %v153_v53, %v151_v52  ;;  %v155_v58 = vld [vmem:[#allocation4 + $0x120] sm:$0xff]  ;;  %v157_v59 = vld [vmem:[#allocation4 + $0x130] sm:$0xff] }
  0x58   :  { %v2017_v57 = vpack.c.bf16 %v158_v55, %v156_v54  ;;  %v160_v60 = vld [vmem:[#allocation4 + $0x148] sm:$0xff]  ;;  %v162_v61 = vld [vmem:[#allocation4 + $0x158] sm:$0xff]  ;;  %v2019_v62 = vpack.c.bf16 %v157_v59, %v155_v58  ;;  %v159_v0 = vld [vmem:[#allocation4 + $0x140] sm:$0xff] }
  0x59   :  { %v2021_v63 = vpack.c.bf16 %v162_v61, %v160_v60  ;;  %v161_v1 = vld [vmem:[#allocation4 + $0x150] sm:$0xff]  ;;  %v164_v2 = vld [vmem:[#allocation4 + $0x168] sm:$0xff]  ;;  %v166_v3 = vld [vmem:[#allocation4 + $0x178] sm:$0xff] }
  0x5a   :  { %1996 = vmatpush1.bf16.msra.mxu0 %v1995_v25  ;;  %v2023_v4 = vpack.c.bf16 %v161_v1, %v159_v0  ;;  %v2025_v5 = vpack.c.bf16 %v166_v3, %v164_v2  ;;  %v163_v6 = vld [vmem:[#allocation4 + $0x160] sm:$0xff]  ;;  %v165_v7 = vld [vmem:[#allocation4 + $0x170] sm:$0xff]  ;;  %v168_v8 = vld [vmem:[#allocation4 + $0x188] sm:$0xff] }
  0x5b   :  { %1998 = vmatprep.subr.bf16.mxu0 %v1997_v26  ;;  %v170_v9 = vld [vmem:[#allocation4 + $0x198] sm:$0xff]  ;;  %v2027_v10 = vpack.c.bf16 %v165_v7, %v163_v6  ;;  %v167_v12 = vld [vmem:[#allocation4 + $0x180] sm:$0xff]  ;;  %v169_v13 = vld [vmem:[#allocation4 + $0x190] sm:$0xff] }
  0x5c   :  { %v2029_v11 = vpack.c.bf16 %v170_v9, %v168_v8  ;;  %v172_v14 = vld [vmem:[#allocation4 + $0x1a8] sm:$0xff]  ;;  %v174_v15 = vld [vmem:[#allocation4 + $0x1b8] sm:$0xff]  ;;  %v2031_v16 = vpack.c.bf16 %v169_v13, %v167_v12  ;;  %v171_v18 = vld [vmem:[#allocation4 + $0x1a0] sm:$0xff] }
  0x5d   :  { %v2033_v17 = vpack.c.bf16 %v174_v15, %v172_v14  ;;  %v173_v19 = vld [vmem:[#allocation4 + $0x1b0] sm:$0xff]  ;;  %v176_v20 = vld [vmem:[#allocation4 + $0x1c8] sm:$0xff]  ;;  %v178_v21 = vld [vmem:[#allocation4 + $0x1d8] sm:$0xff] }
  0x5e   :  { %2000 = vmatpush1.bf16.msra.mxu0 %v1999_v31  ;;  %v2035_v22 = vpack.c.bf16 %v173_v19, %v171_v18  ;;  %v2037_v23 = vpack.c.bf16 %v178_v21, %v176_v20  ;;  %v175_v24 = vld [vmem:[#allocation4 + $0x1c0] sm:$0xff]  ;;  %v177_v25 = vld [vmem:[#allocation4 + $0x1d0] sm:$0xff]  ;;  %v180_v26 = vld [vmem:[#allocation4 + $0x1e8] sm:$0xff] }
  0x5f   :  { %2002 = vmatprep.subr.bf16.mxu0 %v2001_v32  ;;  %v182_v27 = vld [vmem:[#allocation4 + $0x1f8] sm:$0xff]  ;;  %v2039_v28 = vpack.c.bf16 %v177_v25, %v175_v24  ;;  %v179_v30 = vld [vmem:[#allocation4 + $0x1e0] sm:$0xff]  ;;  %v181_v31 = vld [vmem:[#allocation4 + $0x1f0] sm:$0xff] }
  0x60   :  { %v2041_v29 = vpack.c.bf16 %v182_v27, %v180_v26  ;;  %v184_v32 = vld [vmem:[#allocation4 + $0x208] sm:$0xff]  ;;  %v186_v33 = vld [vmem:[#allocation4 + $0x218] sm:$0xff]  ;;  %v2043_v34 = vpack.c.bf16 %v181_v31, %v179_v30  ;;  %v183_v36 = vld [vmem:[#allocation4 + $0x200] sm:$0xff] }
  0x61   :  { %v2045_v35 = vpack.c.bf16 %v186_v33, %v184_v32  ;;  %v190_v39 = vld [vmem:[#allocation4 + $0x238] sm:$0xff]  ;;  %v79_v40 = vld [vmem:[%s2995_s0] sm:$0xff]  ;;  %v187_v42 = vld [vmem:[#allocation4 + $0x220] sm:$0xff] }
  0x62   :  { %2004 = vmatpush1.bf16.msra.mxu0 %v2003_v37  ;;  %v185_v37 = vld [vmem:[#allocation4 + $0x210] sm:$0xff]  ;;  %v194_v47 = vld [vmem:[#allocation4 + $0x258] sm:$0xff]  ;;  %v718_v49 = vld [vmem:[#allocation7 + $0x8] sm:$0xff] }
  0x63   :  { %2006 = vmatprep.subr.bf16.mxu0 %v2005_v38  ;;  %v188_v38 = vld [vmem:[#allocation4 + $0x228] sm:$0xff]  ;;  %v2047_v41 = vpack.c.bf16 %v185_v37, %v183_v36  ;;  %v88_v46 = vld [vmem:[%s2995_s0 + $0x9] sm:$0xff]  ;;  %v717_v53 = vld [vmem:[#allocation7] sm:$0xff] }
  0x64   :  { %v2049_v43 = vpack.c.bf16 %v190_v39, %v188_v38  ;;  %v80_v48 = vld [vmem:[%s2995_s0 + $0x8] sm:$0xff]  ;;  %v720_v52 = vld [vmem:[#allocation7 + $0x18] sm:$0xff]  ;;  %v722_v58 = vld [vmem:[#allocation7 + $0x28] sm:$0xff] }
  0x65   :  { %v719_v54 = vld [vmem:[#allocation7 + $0x10] sm:$0xff]  ;;  %v724_v59 = vld [vmem:[#allocation7 + $0x38] sm:$0xff]  ;;  %v721_v60 = vld [vmem:[#allocation7 + $0x20] sm:$0xff] }
  0x66   :  { %2008 = vmatpush1.bf16.msra.mxu0 %v2007_v44  ;;  %v189_v44 = vld [vmem:[#allocation4 + $0x230] sm:$0xff]  ;;  %v2145_v0 = vpack.c.bf16 %v724_v59, %v722_v58  ;;  %v198_v2 = vld [vmem:[#allocation4 + $0x278] sm:$0xff]  ;;  %v726_v3 = vld [vmem:[#allocation7 + $0x48] sm:$0xff] }
  0x67   :  { %2010 = vmatprep.subr.bf16.mxu0 %v2009_v45  ;;  %v192_v45 = vld [vmem:[#allocation4 + $0x248] sm:$0xff]  ;;  %v2051_v55 = vpack.c.bf16 %v189_v44, %v187_v42  ;;  %v723_v1 = vld [vmem:[#allocation7 + $0x30] sm:$0xff]  ;;  %v81_v8 = vld [vmem:[%s2995_s0 + $0x10] sm:$0xff] }
  0x68   :  { %v2053_v61 = vpack.c.bf16 %v194_v47, %v192_v45  ;;  %v2147_v6 = vpack.c.bf16 %v723_v1, %v721_v60  ;;  %v725_v9 = vld [vmem:[#allocation7 + $0x40] sm:$0xff]  ;;  %v197_v12 = vld [vmem:[#allocation4 + $0x270] sm:$0xff]  ;;  %v200_v13 = vld [vmem:[#allocation4 + $0x288] sm:$0xff] }
  0x69   :  { %v90_v14 = vld [vmem:[%s2995_s0 + $0x19] sm:$0xff]  ;;  %v732_v18 = vld [vmem:[#allocation7 + $0x78] sm:$0xff]  ;;  %v731_v24 = vld [vmem:[#allocation7 + $0x70] sm:$0xff] }
  0x6a   :  { %2012 = vmatpush1.bf16.msra.mxu0 %v2011_v50  ;;  %v191_v50 = vld [vmem:[#allocation4 + $0x240] sm:$0xff]  ;;  %v201_v26 = vld [vmem:[#allocation4 + $0x290] sm:$0xff]  ;;  %v204_v27 = vld [vmem:[#allocation4 + $0x2a8] sm:$0xff] }
  0x6b   :  { %2014 = vmatprep.subr.bf16.mxu0 %v2013_v51  ;;  %v193_v51 = vld [vmem:[#allocation4 + $0x250] sm:$0xff]  ;;  %v199_v19 = vld [vmem:[#allocation4 + $0x280] sm:$0xff]  ;;  %v206_v30 = vld [vmem:[#allocation4 + $0x2b8] sm:$0xff] }
  0x6c   :  { %v2055_v7 = vpack.c.bf16 %v193_v51, %v191_v50  ;;  %v734_v31 = vld [vmem:[#allocation7 + $0x88] sm:$0xff]  ;;  %v736_v32 = vld [vmem:[#allocation7 + $0x98] sm:$0xff]  ;;  %v203_v33 = vld [vmem:[#allocation4 + $0x2a0] sm:$0xff]  ;;  %v2065_v39 = vpack.c.bf16 %v206_v30, %v204_v27 }
  0x6d   :  { %v83_v36 = vld [vmem:[%s2995_s0 + $0x20] sm:$0xff]  ;;  %v733_v37 = vld [vmem:[#allocation7 + $0x80] sm:$0xff]  ;;  %v735_v38 = vld [vmem:[#allocation7 + $0x90] sm:$0xff] }
  0x6e   :  { %2016 = vmatpush1.bf16.msra.mxu0 %v2015_v56  ;;  %v2141_v56 = vpack.c.bf16 %v720_v52, %v718_v49  ;;  %v92_v42 = vld [vmem:[%s2995_s0 + $0x29] sm:$0xff]  ;;  %v738_v45 = vld [vmem:[#allocation7 + $0xa8] sm:$0xff]  ;;  %v207_v47 = vld [vmem:[#allocation4 + $0x2c0] sm:$0xff] }
  0x6f   :  { %2018 = vmatprep.subr.bf16.mxu0 %v2017_v57  ;;  %v2143_v57 = vpack.c.bf16 %v719_v54, %v717_v53  ;;  %v210_v44 = vld [vmem:[#allocation4 + $0x2d8] sm:$0xff]  ;;  %v84_v50 = vld [vmem:[%s2995_s0 + $0x28] sm:$0xff]  ;;  %v737_v51 = vld [vmem:[#allocation7 + $0xa0] sm:$0xff] }
  0x70   :  { %2142 = vmatprep.subr.bf16.mxu1 %v2141_v56  ;;  %v739_v52 = vld [vmem:[#allocation7 + $0xb0] sm:$0xff]  ;;  %v93_v56 = vld [vmem:[%s2995_s0 + $0x31] sm:$0xff]  ;;  %v742_v59 = vld [vmem:[#allocation7 + $0xc8] sm:$0xff] }
  0x71   :  { %2144 = vmatpush1.bf16.msra.mxu1 %v2143_v57  ;;  %v209_v54 = vld [vmem:[#allocation4 + $0x2d0] sm:$0xff]  ;;  %v214_v58 = vld [vmem:[#allocation4 + $0x2f8] sm:$0xff]  ;;  %v741_v1 = vld [vmem:[#allocation7 + $0xc0] sm:$0xff] }
  0x72   :  { %2020 = vmatpush1.bf16.msra.mxu0 %v2019_v62  ;;  %v196_v62 = vld [vmem:[#allocation4 + $0x268] sm:$0xff]  ;;  %2146 = vmatprep.subr.bf16.mxu1 %v2145_v0  ;;  %v744_v60 = vld [vmem:[#allocation7 + $0xd8] sm:$0xff]  ;;  %v219_v27 = vld [vmem:[#allocation4 + $0x320] sm:$0xff] }
  0x73   :  { %2022 = vmatprep.subr.bf16.mxu0 %v2021_v63  ;;  %v89_v63 = vld [vmem:[%s2995_s0 + $0x11] sm:$0xff]  ;;  %v751_v30 = vld [vmem:[#allocation7 + $0x110] sm:$0xff] }
  0x74   :  { %v85_v0 = vld [vmem:[%s2995_s0 + $0x30] sm:$0xff] }
  0x75   :  { %2148 = vmatpush1.bf16.msra.mxu1 %v2147_v6  ;;  %v94_v6 = vld [vmem:[%s2995_s0 + $0x39] sm:$0xf] }
  0x76   :  { %2024 = vmatpush1.bf16.msra.mxu0 %v2023_v4  ;;  %v728_v4 = vld [vmem:[#allocation7 + $0x58] sm:$0xff] }
  0x77   :  { %2026 = vmatprep.subr.bf16.mxu0 %v2025_v5  ;;  %v195_v5 = vld [vmem:[#allocation4 + $0x260] sm:$0xff]  ;;  %v2149_v15 = vpack.c.bf16 %v728_v4, %v726_v3  ;;  %v213_v4 = vld [vmem:[#allocation4 + $0x2f0] sm:$0xff] }
  0x78   :  { %v2059_v21 = vpack.c.bf16 %v197_v12, %v195_v5  ;;  %v216_v5 = vld [vmem:[#allocation4 + $0x308] sm:$0xff]  ;;  %v217_v12 = vld [vmem:[#allocation4 + $0x310] sm:$0xff] }
  0x79   :  { %2150 = vmatprep.subr.bf16.mxu1 %v2149_v15  ;;  %v86_v15 = vld [vmem:[%s2995_s0 + $0x38] sm:$0xf] }
  0x7a   :  { %2028 = vmatpush1.bf16.msra.mxu0 %v2027_v10  ;;  %v727_v10 = vld [vmem:[#allocation7 + $0x50] sm:$0xff] }
  0x7b   :  { %2030 = vmatprep.subr.bf16.mxu0 %v2029_v11  ;;  %v2057_v11 = vpack.c.bf16 %v198_v2, %v196_v62  ;;  %v2151_v20 = vpack.c.bf16 %v727_v10, %v725_v9  ;;  %v2163_v62 = vpack.c.bf16 %v739_v52, %v737_v51  ;;  %v743_v2 = vld [vmem:[#allocation7 + $0xd0] sm:$0xff]  ;;  %v746_v9 = vld [vmem:[#allocation7 + $0xe8] sm:$0xff]  ;;  %v748_v10 = vld [vmem:[#allocation7 + $0xf8] sm:$0xff] }
  0x7d   :  { %2152 = vmatpush1.bf16.msra.mxu1 %v2151_v20  ;;  %v2169_v20 = vpack.c.bf16 %v748_v10, %v746_v9  ;;  %v248_v9 = vld [vmem:[#allocation4 + $0x408] sm:$0xff]  ;;  %v250_v10 = vld [vmem:[#allocation4 + $0x418] sm:$0xff] }
  0x7e   :  { %2032 = vmatpush1.bf16.msra.mxu0 %v2031_v16  ;;  %v202_v16 = vld [vmem:[#allocation4 + $0x298] sm:$0xff] }
  0x7f   :  { %2034 = vmatprep.subr.bf16.mxu0 %v2033_v17  ;;  %v730_v17 = vld [vmem:[#allocation7 + $0x68] sm:$0xff]  ;;  %v2061_v25 = vpack.c.bf16 %v202_v16, %v200_v13  ;;  %v2167_v13 = vpack.c.bf16 %v743_v2, %v741_v1  ;;  %v745_v16 = vld [vmem:[#allocation7 + $0xe0] sm:$0xff]  ;;  %v241_v2 = vld [vmem:[#allocation4 + $0x3d0] sm:$0xff] }
  0x80   :  { %v239_v1 = vld [vmem:[#allocation4 + $0x3c0] sm:$0xff] }
  0x82   :  { %2036 = vmatpush1.bf16.msra.mxu0 %v2035_v22  ;;  %v82_v22 = vld [vmem:[%s2995_s0 + $0x18] sm:$0xff] }
  0x83   :  { %2038 = vmatprep.subr.bf16.mxu0 %v2037_v23  ;;  %v729_v23 = vld [vmem:[#allocation7 + $0x60] sm:$0xff] }
  0x86   :  { %2040 = vmatpush1.bf16.msra.mxu0 %v2039_v28  ;;  %v91_v28 = vld [vmem:[%s2995_s0 + $0x21] sm:$0xff] }
  0x87   :  { %2042 = vmatprep.subr.bf16.mxu0 %v2041_v29  ;;  %v2153_v29 = vpack.c.bf16 %v732_v18, %v730_v17  ;;  %v747_v17 = vld [vmem:[#allocation7 + $0xf0] sm:$0xff] }
  0x89   :  { %2154 = vmatprep.subr.bf16.mxu1 %v2153_v29  ;;  %v749_v29 = vld [vmem:[#allocation7 + $0x100] sm:$0xff] }
  0x8a   :  { %2044 = vmatpush1.bf16.msra.mxu0 %v2043_v34  ;;  %v2155_v34 = vpack.c.bf16 %v731_v24, %v729_v23  ;;  %v220_v23 = vld [vmem:[#allocation4 + $0x328] sm:$0xff]  ;;  %v222_v24 = vld [vmem:[#allocation4 + $0x338] sm:$0xff] }
  0x8b   :  { %2046 = vmatprep.subr.bf16.mxu0 %v2045_v35  ;;  %v2063_v35 = vpack.c.bf16 %v201_v26, %v199_v19  ;;  %v103_v19 = vld [vmem:[%s2995_s0 + $0x3] sm:$0xff] }
  0x8c   :  { %2156 = vmatpush1.bf16.msra.mxu1 %v2155_v34  ;;  %v756_v34 = vld [vmem:[#allocation7 + $0x138] sm:$0xff] }
  0x8d   :  { %344 = vmatmul.mubr.f32.vlgmr.msra.gmra.mrb[0].mxu0 %v79_v40  ;;  %v205_v40 = vld [vmem:[#allocation4 + $0x2b0] sm:$0xff] }
  0x8e   :  { %2048 = vmatpush1.bf16.msra.mxu0 %v2047_v41  ;;  %349 = vmatprep.mubr.f32.mxu0 %v88_v46  ;;  %v208_v41 = vld [vmem:[#allocation4 + $0x2c8] sm:$0xff]  ;;  %v740_v46 = vld [vmem:[#allocation7 + $0xb8] sm:$0xff]  ;;  %v2067_v49 = vpack.c.bf16 %v205_v40, %v203_v33 }
  0x8f   :  { %2050 = vmatprep.subr.bf16.mxu0 %v2049_v43  ;;  %v2157_v43 = vpack.c.bf16 %v736_v32, %v734_v31  ;;  %v2069_v53 = vpack.c.bf16 %v210_v44, %v208_v41  ;;  %v2161_v57 = vpack.c.bf16 %v740_v46, %v738_v45  ;;  %v2081_v31 = vpack.c.bf16 %v222_v24, %v220_v23  ;;  %v221_v32 = vld [vmem:[#allocation4 + $0x330] sm:$0xff]  ;;  %v754_v33 = vld [vmem:[#allocation7 + $0x128] sm:$0xff]  ;;  %v223_v41 = vld [vmem:[#allocation4 + $0x340] sm:$0xff] }
  0x90   :  { %v230_v44 = vld [vmem:[#allocation4 + $0x378] sm:$0xff]  ;;  %v256_v23 = vld [vmem:[#allocation4 + $0x448] sm:$0xff] }
  0x91   :  { %350 = vmatmul.mubr.f32.gmra.mrb[2].mxu0 %v80_v48  ;;  %v2159_v48 = vpack.c.bf16 %v735_v38, %v733_v37  ;;  %2158 = vmatprep.subr.bf16.mxu1 %v2157_v43  ;;  %v2175_v37 = vpack.c.bf16 %v751_v30, %v749_v29  ;;  %v2083_v38 = vpack.c.bf16 %v221_v32, %v219_v27  ;;  %v228_v43 = vld [vmem:[#allocation4 + $0x368] sm:$0xff]  ;;  %v258_v24 = vld [vmem:[#allocation4 + $0x458] sm:$0xff]  ;;  %v255_v29 = vld [vmem:[#allocation4 + $0x440] sm:$0xff] }
  0x92   :  { %2052 = vmatpush1.bf16.msra.mxu0 %v2051_v55  ;;  %355 = vmatprep.mubr.f32.mxu0 %v89_v63  ;;  %v212_v55 = vld [vmem:[#allocation4 + $0x2e8] sm:$0xff]  ;;  %v2071_v63 = vpack.c.bf16 %v209_v54, %v207_v47  ;;  %v2089_v46 = vpack.c.bf16 %v230_v44, %v228_v43  ;;  %v227_v47 = vld [vmem:[#allocation4 + $0x360] sm:$0xff]  ;;  %v233_v54 = vld [vmem:[#allocation4 + $0x390] sm:$0xff] }
  0x93   :  { %2054 = vmatprep.subr.bf16.mxu0 %v2053_v61  ;;  %v211_v61 = vld [vmem:[#allocation4 + $0x2e0] sm:$0xff]  ;;  %2160 = vmatpush1.bf16.msra.mxu1 %v2159_v48  ;;  %v2073_v3 = vpack.c.bf16 %v214_v58, %v212_v55  ;;  %v229_v48 = vld [vmem:[#allocation4 + $0x370] sm:$0xff]  ;;  %v236_v55 = vld [vmem:[#allocation4 + $0x3a8] sm:$0xff] }
  0x94   :  { %2162 = vmatprep.subr.bf16.mxu1 %v2161_v57  ;;  %v2091_v51 = vpack.c.bf16 %v229_v48, %v227_v47  ;;  %v105_v27 = vld [vmem:[%s2995_s0 + $0x13] sm:$0xff]  ;;  %v257_v30 = vld [vmem:[#allocation4 + $0x450] sm:$0xff]  ;;  %v268_v47 = vld [vmem:[#allocation4 + $0x4a8] sm:$0xff] }
  0x95   :  { %356 = vmatmul.mubr.f32.gmra.mrb[4].mxu0 %v81_v8  ;;  %v218_v8 = vld [vmem:[#allocation4 + $0x318] sm:$0xff]  ;;  %v107_v43 = vld [vmem:[%s2995_s0 + $0x23] sm:$0xff] }
  0x96   :  { %2056 = vmatpush1.bf16.msra.mxu0 %v2055_v7  ;;  %361 = vmatprep.mubr.f32.mxu0 %v90_v14  ;;  %v2165_v7 = vpack.c.bf16 %v744_v60, %v742_v59  ;;  %v2075_v14 = vpack.c.bf16 %v213_v4, %v211_v61  ;;  %v2077_v18 = vpack.c.bf16 %v218_v8, %v216_v5  ;;  %v235_v59 = vld [vmem:[#allocation4 + $0x3a0] sm:$0xff]  ;;  %v237_v60 = vld [vmem:[#allocation4 + $0x3b0] sm:$0xff]  ;;  %v240_v61 = vld [vmem:[#allocation4 + $0x3c8] sm:$0xff] }
  0x97   :  { %2058 = vmatprep.subr.bf16.mxu0 %v2057_v11  ;;  %v215_v11 = vld [vmem:[#allocation4 + $0x300] sm:$0xff]  ;;  %2164 = vmatpush1.bf16.msra.mxu1 %v2163_v62  ;;  %v242_v62 = vld [vmem:[#allocation4 + $0x3d8] sm:$0xff]  ;;  %v2103_v5 = vpack.c.bf16 %v241_v2, %v239_v1  ;;  %v245_v8 = vld [vmem:[#allocation4 + $0x3f0] sm:$0xff] }
  0x98   :  { %2166 = vmatprep.subr.bf16.mxu1 %v2165_v7  ;;  %v2079_v26 = vpack.c.bf16 %v217_v12, %v215_v11  ;;  %v246_v4 = vld [vmem:[#allocation4 + $0x3f8] sm:$0xff]  ;;  %v243_v7 = vld [vmem:[#allocation4 + $0x3e0] sm:$0xff]  ;;  %v2109_v12 = vpack.c.bf16 %v250_v10, %v248_v9  ;;  %v2635_v9 = vmov 0.0   ;;  %v111_v10 = vld [vmem:[%s2995_s0 + $0x4] sm:$0xff] }
  0x99   :  { %362 = vmatmul.mubr.f32.gmra.mrb[6].mxu0 %v82_v22  ;;  %v752_v22 = vld [vmem:[#allocation7 + $0x118] sm:$0xff]  ;;  %v2107_v11 = vpack.c.bf16 %v245_v8, %v243_v7  ;;  %v102_v7 = vld [vmem:[%s2995_s0 + $0x3a] sm:$0xf] }
  0x9a   :  { %2060 = vmatpush1.bf16.msra.mxu0 %v2059_v21  ;;  %367 = vmatprep.mubr.f32.mxu0 %v91_v28  ;;  %v750_v21 = vld [vmem:[#allocation7 + $0x108] sm:$0xff]  ;;  %v262_v32 = vld [vmem:[#allocation4 + $0x478] sm:$0xff] }
  0x9b   :  { %2062 = vmatprep.subr.bf16.mxu0 %v2061_v25  ;;  %2168 = vmatpush1.bf16.msra.mxu1 %v2167_v13  ;;  %v2171_v25 = vpack.c.bf16 %v747_v17, %v745_v16  ;;  %v2173_v28 = vpack.c.bf16 %v752_v22, %v750_v21  ;;  %v247_v13 = vld [vmem:[#allocation4 + $0x400] sm:$0xff]  ;;  %v254_v16 = vld [vmem:[#allocation4 + $0x438] sm:$0xff]  ;;  %v95_v17 = vld [vmem:[%s2995_s0 + $0x2] sm:$0xff] }
  0x9c   :  { %2170 = vmatprep.subr.bf16.mxu1 %v2169_v20  ;;  %v251_v21 = vld [vmem:[#allocation4 + $0x420] sm:$0xff]  ;;  %v253_v22 = vld [vmem:[#allocation4 + $0x430] sm:$0xff]  ;;  %v270_v48 = vld [vmem:[#allocation4 + $0x4b8] sm:$0xff] }
  0x9d   :  { %368 = vmatmul.mubr.f32.gmra.mrb[8].mxu0 %v83_v36  ;;  %v226_v36 = vld [vmem:[#allocation4 + $0x358] sm:$0xff] }
  0x9e   :  { %2064 = vmatpush1.bf16.msra.mxu0 %v2063_v35  ;;  %373 = vmatprep.mubr.f32.mxu0 %v92_v42  ;;  %v224_v35 = vld [vmem:[#allocation4 + $0x348] sm:$0xff]  ;;  %v225_v42 = vld [vmem:[#allocation4 + $0x350] sm:$0xff]  ;;  %v101_v1 = vld [vmem:[%s2995_s0 + $0x32] sm:$0xff] }
  0x9f   :  { %2066 = vmatprep.subr.bf16.mxu0 %v2065_v39  ;;  %2172 = vmatpush1.bf16.msra.mxu1 %v2171_v25  ;;  %v2177_v39 = vpack.c.bf16 %v756_v34, %v754_v33  ;;  %v2085_v40 = vpack.c.bf16 %v226_v36, %v224_v35  ;;  %v2087_v45 = vpack.c.bf16 %v225_v42, %v223_v41  ;;  %v96_v25 = vld [vmem:[%s2995_s0 + $0xa] sm:$0xff]  ;;  %v97_v33 = vld [vmem:[%s2995_s0 + $0x12] sm:$0xff]  ;;  %v106_v35 = vld [vmem:[%s2995_s0 + $0x1b] sm:$0xff] }
  0xa0   :  { %2174 = vmatprep.subr.bf16.mxu1 %v2173_v28  ;;  %v2117_v28 = vpack.c.bf16 %v258_v24, %v256_v23  ;;  %v2119_v34 = vpack.c.bf16 %v257_v30, %v255_v29  ;;  %v98_v41 = vld [vmem:[%s2995_s0 + $0x1a] sm:$0xff] }
  0xa1   :  { %374 = vmatmul.mubr.f32.gmra.mrb[10].mxu0 %v84_v50  ;;  %v234_v50 = vld [vmem:[#allocation4 + $0x398] sm:$0xff]  ;;  %v757_v24 = vld [vmem:[#allocation7 + $0x140] sm:$0xff] }
  0xa2   :  { %2068 = vmatpush1.bf16.msra.mxu0 %v2067_v49  ;;  %379 = vmatprep.mubr.f32.mxu0 %v93_v56  ;;  %v232_v49 = vld [vmem:[#allocation4 + $0x388] sm:$0xff]  ;;  %v238_v56 = vld [vmem:[#allocation4 + $0x3b8] sm:$0xff]  ;;  %v761_v30 = vld [vmem:[#allocation7 + $0x160] sm:$0xff] }
  0xa3   :  { %2070 = vmatprep.subr.bf16.mxu0 %v2069_v53  ;;  %2176 = vmatpush1.bf16.msra.mxu1 %v2175_v37  ;;  %v2093_v52 = vpack.c.bf16 %v234_v50, %v232_v49  ;;  %v231_v53 = vld [vmem:[#allocation4 + $0x380] sm:$0xff]  ;;  %v2097_v58 = vpack.c.bf16 %v238_v56, %v236_v55  ;;  %v99_v49 = vld [vmem:[%s2995_s0 + $0x22] sm:$0xff]  ;;  %v274_v56 = vld [vmem:[#allocation4 + $0x4d8] sm:$0xff] }
  0xa4   :  { %2178 = vmatprep.subr.bf16.mxu1 %v2177_v39  ;;  %v2095_v57 = vpack.c.bf16 %v233_v54, %v231_v53  ;;  %v259_v37 = vld [vmem:[#allocation4 + $0x460] sm:$0xff]  ;;  %v264_v39 = vld [vmem:[#allocation4 + $0x488] sm:$0xff]  ;;  %v269_v54 = vld [vmem:[#allocation4 + $0x4b0] sm:$0xff] }
  0xa5   :  { %380 = vmatmul.mubr.f32.gmra.mrb[12].mxu0 %v85_v0  ;;  %v2101_v0 = vpack.c.bf16 %v242_v62, %v240_v61  ;;  %v267_v53 = vld [vmem:[#allocation4 + $0x4a0] sm:$0xff]  ;;  %v272_v55 = vld [vmem:[#allocation4 + $0x4c8] sm:$0xff]  ;;  %v273_v62 = vld [vmem:[#allocation4 + $0x4d0] sm:$0xff] }
  0xa6   :  { %2072 = vmatpush1.bf16.msra.mxu0 %v2071_v63  ;;  %385 = vmatprep.mubr.f32.mxu0 %v94_v6  ;;  %v2099_v63 = vpack.c.bf16 %v237_v60, %v235_v59  ;;  %v109_v59 = vld [vmem:[%s2995_s0 + $0x33] sm:$0xff]  ;;  %v2133_v60 = vpack.c.bf16 %v274_v56, %v272_v55  ;;  %v779_v55 = vld [vmem:[#allocation7 + $0x1f0] sm:$0xff] }
  0xa7   :  { %2074 = vmatprep.subr.bf16.mxu0 %v2073_v3  ;;  %v244_v3 = vld [vmem:[#allocation4 + $0x3e8] sm:$0xff]  ;;  %v271_v61 = vld [vmem:[#allocation4 + $0x4c0] sm:$0xff] }
  0xa8   :  { %v2105_v6 = vpack.c.bf16 %v246_v4, %v244_v3  ;;  %v2135_v2 = vpack.c.bf16 %v273_v62, %v271_v61  ;;  %v110_v3 = vld [vmem:[%s2995_s0 + $0x3b] sm:$0xf] }
  0xa9   :  { %386 = vmatmul.mubr.f32.gmra.mrb[14].mxu0 %v86_v15  ;;  %v252_v15 = vld [vmem:[#allocation4 + $0x428] sm:$0xff] }
  0xaa   :  { %2076 = vmatpush1.bf16.msra.mxu0 %v2075_v14  ;;  %456 = vmatprep.mubr.f32.mxu0 %v103_v19  ;;  %v249_v14 = vld [vmem:[#allocation4 + $0x410] sm:$0xff]  ;;  %v2113_v20 = vpack.c.bf16 %v254_v16, %v252_v15  ;;  %v117_v16 = vld [vmem:[%s2995_s0 + $0x34] sm:$0xff] }
  0xab   :  { %2078 = vmatprep.subr.bf16.mxu0 %v2077_v18  ;;  %v2111_v18 = vpack.c.bf16 %v249_v14, %v247_v13  ;;  %v104_v19 = vld [vmem:[%s2995_s0 + $0xb] sm:$0xff]  ;;  %v114_v13 = vld [vmem:[%s2995_s0 + $0x1c] sm:$0xff] }
  0xac   :  { %v115_v14 = vld [vmem:[%s2995_s0 + $0x24] sm:$0xff]  ;;  %v116_v15 = vld [vmem:[%s2995_s0 + $0x2c] sm:$0xff] }
  0xae   :  { %2080 = vmatpush1.bf16.msra.mxu0 %v2079_v26  ;;  %v2115_v26 = vpack.c.bf16 %v253_v22, %v251_v21  ;;  %v758_v21 = vld [vmem:[#allocation7 + $0x148] sm:$0xff]  ;;  %v760_v22 = vld [vmem:[#allocation7 + $0x158] sm:$0xff] }
  0xaf   :  { %2082 = vmatprep.subr.bf16.mxu0 %v2081_v31  ;;  %v260_v31 = vld [vmem:[#allocation4 + $0x468] sm:$0xff]  ;;  %v2181_v23 = vpack.c.bf16 %v760_v22, %v758_v21 }
  0xb0   :  { %v2121_v36 = vpack.c.bf16 %v262_v32, %v260_v31  ;;  %v763_v31 = vld [vmem:[#allocation7 + $0x170] sm:$0xff] }
  0xb1   :  { %v2187_v32 = vpack.c.bf16 %v763_v31, %v761_v30  ;;  %v781_v30 = vld [vmem:[#allocation7 + $0x200] sm:$0xff]  ;;  %v783_v31 = vld [vmem:[#allocation7 + $0x210] sm:$0xff] }
  0xb2   :  { %2084 = vmatpush1.bf16.msra.mxu0 %v2083_v38  ;;  %v261_v38 = vld [vmem:[#allocation4 + $0x470] sm:$0xff] }
  0xb3   :  { %2086 = vmatprep.subr.bf16.mxu0 %v2085_v40  ;;  %v266_v40 = vld [vmem:[#allocation4 + $0x498] sm:$0xff]  ;;  %v2123_v42 = vpack.c.bf16 %v261_v38, %v259_v37  ;;  %v767_v37 = vld [vmem:[#allocation7 + $0x190] sm:$0xff] }
  0xb4   :  { %v2125_v44 = vpack.c.bf16 %v266_v40, %v264_v39  ;;  %v770_v39 = vld [vmem:[#allocation7 + $0x1a8] sm:$0xff]  ;;  %v772_v40 = vld [vmem:[#allocation7 + $0x1b8] sm:$0xff] }
  0xb6   :  { %2088 = vmatpush1.bf16.msra.mxu0 %v2087_v45  ;;  %v263_v45 = vld [vmem:[#allocation4 + $0x480] sm:$0xff] }
  0xb7   :  { %2090 = vmatprep.subr.bf16.mxu0 %v2089_v46  ;;  %v265_v46 = vld [vmem:[#allocation4 + $0x490] sm:$0xff] }
  0xb8   :  { %v2127_v50 = vpack.c.bf16 %v265_v46, %v263_v45  ;;  %v774_v45 = vld [vmem:[#allocation7 + $0x1c8] sm:$0xff]  ;;  %v776_v46 = vld [vmem:[#allocation7 + $0x1d8] sm:$0xff] }
  0xba   :  { %2092 = vmatpush1.bf16.msra.mxu0 %v2091_v51  ;;  %v108_v51 = vld [vmem:[%s2995_s0 + $0x2b] sm:$0xff] }
  0xbb   :  { %2094 = vmatprep.subr.bf16.mxu0 %v2093_v52  ;;  %v2129_v52 = vpack.c.bf16 %v270_v48, %v268_v47  ;;  %v2197_v47 = vpack.c.bf16 %v776_v46, %v774_v45  ;;  %v773_v48 = vld [vmem:[#allocation7 + $0x1c0] sm:$0xff]  ;;  %v787_v45 = vld [vmem:[#allocation7 + $0x230] sm:$0xff] }
  0xbe   :  { %2096 = vmatpush1.bf16.msra.mxu0 %v2095_v57  ;;  %v100_v57 = vld [vmem:[%s2995_s0 + $0x2a] sm:$0xff] }
  0xbf   :  { %2098 = vmatprep.subr.bf16.mxu0 %v2097_v58  ;;  %v2131_v58 = vpack.c.bf16 %v269_v54, %v267_v53  ;;  %v777_v54 = vld [vmem:[#allocation7 + $0x1e0] sm:$0xff] }
  0xc0   :  { %v2203_v56 = vpack.c.bf16 %v779_v55, %v777_v54 }
  0xc2   :  { %2100 = vmatpush1.bf16.msra.mxu0 %v2099_v63  ;;  %v276_v63 = vld [vmem:[#allocation4 + $0x4e8] sm:$0xff] }
  0xc3   :  { %2102 = vmatprep.subr.bf16.mxu0 %v2101_v0  ;;  %v278_v0 = vld [vmem:[#allocation4 + $0x4f8] sm:$0xff] }
  0xc4   :  { %v2137_v4 = vpack.c.bf16 %v278_v0, %v276_v63 }
  0xc6   :  { %2104 = vmatpush1.bf16.msra.mxu0 %v2103_v5  ;;  %v275_v5 = vld [vmem:[#allocation4 + $0x4e0] sm:$0xff] }
  0xc7   :  { %2106 = vmatprep.subr.bf16.mxu0 %v2105_v6  ;;  %v277_v6 = vld [vmem:[#allocation4 + $0x4f0] sm:$0xff] }
  0xc8   :  { %v2139_v8 = vpack.c.bf16 %v277_v6, %v275_v5 }
  0xca   :  { %2108 = vmatpush1.bf16.msra.mxu0 %v2107_v11  ;;  %v112_v11 = vld [vmem:[%s2995_s0 + $0xc] sm:$0xff] }
  0xcb   :  { %2110 = vmatprep.subr.bf16.mxu0 %v2109_v12  ;;  %v113_v12 = vld [vmem:[%s2995_s0 + $0x14] sm:$0xff] }
  0xcd   :  { %457 = vmatmul.mubr.f32.vlgmr.msra.gmra.mrb[0].mxu0 %v95_v17  ;;  %v118_v17 = vld [vmem:[%s2995_s0 + $0x3c] sm:$0xf] }
  0xce   :  { %2112 = vmatpush1.bf16.msra.mxu0 %v2111_v18  ;;  %462 = vmatprep.mubr.f32.mxu0 %v104_v19  ;;  %v753_v18 = vld [vmem:[#allocation7 + $0x120] sm:$0xff]  ;;  %v755_v19 = vld [vmem:[#allocation7 + $0x130] sm:$0xff] }
  0xcf   :  { %2114 = vmatprep.subr.bf16.mxu0 %v2113_v20  ;;  %v2179_v20 = vpack.c.bf16 %v755_v19, %v753_v18 }
  0xd1   :  { %463 = vmatmul.mubr.f32.gmra.mrb[2].mxu0 %v96_v25  ;;  %2180 = vmatpush1.bf16.msra.mxu1 %v2179_v20  ;;  %v759_v25 = vld [vmem:[#allocation7 + $0x150] sm:$0xff] }
  0xd2   :  { %2116 = vmatpush1.bf16.msra.mxu0 %v2115_v26  ;;  %468 = vmatprep.mubr.f32.mxu0 %v105_v27  ;;  %v2183_v26 = vpack.c.bf16 %v759_v25, %v757_v24  ;;  %v762_v27 = vld [vmem:[#allocation7 + $0x168] sm:$0xff] }
  0xd3   :  { %2118 = vmatprep.subr.bf16.mxu0 %v2117_v28  ;;  %2182 = vmatprep.subr.bf16.mxu1 %v2181_v23  ;;  %v764_v28 = vld [vmem:[#allocation7 + $0x178] sm:$0xff] }
  0xd4   :  { %v2185_v29 = vpack.c.bf16 %v764_v28, %v762_v27 }
  0xd5   :  { %469 = vmatmul.mubr.f32.gmra.mrb[4].mxu0 %v97_v33  ;;  %2184 = vmatpush1.bf16.msra.mxu1 %v2183_v26  ;;  %v766_v33 = vld [vmem:[#allocation7 + $0x188] sm:$0xff] }
  0xd6   :  { %2120 = vmatpush1.bf16.msra.mxu0 %v2119_v34  ;;  %474 = vmatprep.mubr.f32.mxu0 %v106_v35  ;;  %v768_v34 = vld [vmem:[#allocation7 + $0x198] sm:$0xff] }
  0xd7   :  { %2122 = vmatprep.subr.bf16.mxu0 %v2121_v36  ;;  %2186 = vmatprep.subr.bf16.mxu1 %v2185_v29  ;;  %v2189_v35 = vpack.c.bf16 %v768_v34, %v766_v33  ;;  %v765_v36 = vld [vmem:[#allocation7 + $0x180] sm:$0xff]  ;;  %v786_v33 = vld [vmem:[#allocation7 + $0x228] sm:$0xff]  ;;  %v788_v34 = vld [vmem:[#allocation7 + $0x238] sm:$0xff] }
  0xd8   :  { %v2191_v38 = vpack.c.bf16 %v767_v37, %v765_v36 }
  0xd9   :  { %475 = vmatmul.mubr.f32.gmra.mrb[6].mxu0 %v98_v41  ;;  %2188 = vmatpush1.bf16.msra.mxu1 %v2187_v32  ;;  %v2193_v41 = vpack.c.bf16 %v772_v40, %v770_v39  ;;  %v2207_v39 = vpack.c.bf16 %v783_v31, %v781_v30 }
  0xda   :  { %2124 = vmatpush1.bf16.msra.mxu0 %v2123_v42  ;;  %480 = vmatprep.mubr.f32.mxu0 %v107_v43  ;;  %v769_v42 = vld [vmem:[#allocation7 + $0x1a0] sm:$0xff]  ;;  %v771_v43 = vld [vmem:[#allocation7 + $0x1b0] sm:$0xff] }
  0xdb   :  { %2126 = vmatprep.subr.bf16.mxu0 %v2125_v44  ;;  %2190 = vmatprep.subr.bf16.mxu1 %v2189_v35  ;;  %v2195_v44 = vpack.c.bf16 %v771_v43, %v769_v42  ;;  %v2209_v43 = vpack.c.bf16 %v788_v34, %v786_v33  ;;  %v805_v33 = vld [vmem:[#allocation7 + $0x2c0] sm:$0xff]  ;;  %v807_v34 = vld [vmem:[#allocation7 + $0x2d0] sm:$0xff] }
  0xdd   :  { %481 = vmatmul.mubr.f32.gmra.mrb[8].mxu0 %v99_v49  ;;  %2192 = vmatpush1.bf16.msra.mxu1 %v2191_v38  ;;  %v775_v49 = vld [vmem:[#allocation7 + $0x1d0] sm:$0xff] }
  0xde   :  { %2128 = vmatpush1.bf16.msra.mxu0 %v2127_v50  ;;  %486 = vmatprep.mubr.f32.mxu0 %v108_v51  ;;  %v2199_v50 = vpack.c.bf16 %v775_v49, %v773_v48  ;;  %v778_v51 = vld [vmem:[#allocation7 + $0x1e8] sm:$0xff]  ;;  %v792_v48 = vld [vmem:[#allocation7 + $0x258] sm:$0xff] }
  0xdf   :  { %2130 = vmatprep.subr.bf16.mxu0 %v2129_v52  ;;  %2194 = vmatprep.subr.bf16.mxu1 %v2193_v41  ;;  %v780_v52 = vld [vmem:[#allocation7 + $0x1f8] sm:$0xff] }
  0xe0   :  { %v2201_v53 = vpack.c.bf16 %v780_v52, %v778_v51 }
  0xe1   :  { %487 = vmatmul.mubr.f32.gmra.mrb[10].mxu0 %v100_v57  ;;  %2196 = vmatpush1.bf16.msra.mxu1 %v2195_v44  ;;  %v782_v57 = vld [vmem:[#allocation7 + $0x208] sm:$0xff]  ;;  %v785_v44 = vld [vmem:[#allocation7 + $0x220] sm:$0xff] }
  0xe2   :  { %2132 = vmatpush1.bf16.msra.mxu0 %v2131_v58  ;;  %492 = vmatprep.mubr.f32.mxu0 %v109_v59  ;;  %v784_v58 = vld [vmem:[#allocation7 + $0x218] sm:$0xff] }
  0xe3   :  { %2134 = vmatprep.subr.bf16.mxu0 %v2133_v60  ;;  %2198 = vmatprep.subr.bf16.mxu1 %v2197_v47  ;;  %v2205_v59 = vpack.c.bf16 %v784_v58, %v782_v57  ;;  %v790_v47 = vld [vmem:[#allocation7 + $0x248] sm:$0xff]  ;;  %v789_v58 = vld [vmem:[#allocation7 + $0x240] sm:$0xff] }
  0xe4   :  { %v2213_v57 = vpack.c.bf16 %v792_v48, %v790_v47 }
  0xe5   :  { %493 = vmatmul.mubr.f32.gmra.mrb[12].mxu0 %v101_v1  ;;  %2200 = vmatpush1.bf16.msra.mxu1 %v2199_v50 }
  0xe6   :  { %2136 = vmatpush1.bf16.msra.mxu0 %v2135_v2  ;;  %498 = vmatprep.mubr.f32.mxu0 %v110_v3 }
  0xe7   :  { %2138 = vmatprep.subr.bf16.mxu0 %v2137_v4  ;;  %2202 = vmatprep.subr.bf16.mxu1 %v2201_v53  ;;  %v2211_v53 = vpack.c.bf16 %v787_v45, %v785_v44  ;;  %v814_v44 = vld [vmem:[#allocation7 + $0x308] sm:$0xff]  ;;  %v816_v45 = vld [vmem:[#allocation7 + $0x318] sm:$0xff] }
  0xe8   :  { %v2237_v48 = vpack.c.bf16 %v816_v45, %v814_v44 }
  0xe9   :  { %499 = vmatmul.mubr.f32.gmra.mrb[14].mxu0 %v102_v7  ;;  %2204 = vmatpush1.bf16.msra.mxu1 %v2203_v56 }
  0xea   :  { %2140 = vmatpush1.bf16.msra.mxu0 %v2139_v8  ;;  %569 = vmatprep.mubr.f32.mxu0 %v2635_v9 }
  0xeb   :  { %2206 = vmatprep.subr.bf16.mxu1 %v2205_v59  ;;  %v791_v59 = vld [vmem:[#allocation7 + $0x250] sm:$0xff] }
  0xed   :  { %570 = vmatmul.mubr.f32.vlgmr.msra.gmra.mrb[0].mxu0 %v111_v10 }
  0xee   :  { %575 = vmatprep.mubr.f32.mxu0 %v2635_v9 }
  0xf1   :  { %576 = vmatmul.mubr.f32.gmra.mrb[2].mxu0 %v112_v11 }
  0xf2   :  { %581 = vmatprep.mubr.f32.mxu0 %v2635_v9 }
  0xf5   :  { %582 = vmatmul.mubr.f32.gmra.mrb[4].mxu0 %v113_v12 }
  0xf6   :  { %587 = vmatprep.mubr.f32.mxu0 %v2635_v9 }
  0xf9   :  { %588 = vmatmul.mubr.f32.gmra.mrb[6].mxu0 %v114_v13 }
  0xfa   :  { %593 = vmatprep.mubr.f32.mxu0 %v2635_v9 }
  0xfd   :  { %594 = vmatmul.mubr.f32.gmra.mrb[8].mxu0 %v115_v14 }
  0xfe   :  { %599 = vmatprep.mubr.f32.mxu0 %v2635_v9 }
 0x101   :  { %600 = vmatmul.mubr.f32.gmra.mrb[10].mxu0 %v116_v15 }
 0x102   :  { %605 = vmatprep.mubr.f32.mxu0 %v2635_v9 }
 0x105   :  { %606 = vmatmul.mubr.f32.gmra.mrb[12].mxu0 %v117_v16 }
 0x106   :  { %611 = vmatprep.mubr.f32.mxu0 %v2635_v9 }
 0x109   :  { %612 = vmatmul.mubr.f32.gmra.mrb[14].mxu0 %v118_v17 }
 0x1c0   :  { %v571_v60 = vpop.f32.mrb[0].mxu0 }
 0x1c1   :  { %v573_v61 = vpop.f32.mrb[1].mxu0 }
 0x1c2   :  { %v618_v62 = vmax.f32 %v571_v60, %v573_v61  ;;  %v794_v61 = vld [vmem:[#allocation7 + $0x268] sm:$0xff] }
 0x1c4   :  { %v577_v63 = vpop.f32.mrb[2].mxu0  ;;  %v635_v2 = vrot.slane %v618_v62, 1 }
 0x1c5   :  { %v579_v0 = vpop.f32.mrb[3].mxu0 }
 0x1c6   :  { %v619_v1 = vmax.f32 %v577_v63, %v579_v0 }
 0x1c8   :  { %v636_v3 = vrot.slane %v619_v1, 1  ;;  %v583_v4 = vpop.f32.mrb[4].mxu0 }
 0x1c9   :  { %v585_v5 = vpop.f32.mrb[5].mxu0 }
 0x1ca   :  { %v637_v6 = vsel %vm634_vm0, %v635_v2, %v636_v3  ;;  %v620_v7 = vmax.f32 %v583_v4, %v585_v5 }
 0x1cb   :  { %v658_v8 = vmax.f32 %v618_v62, %v637_v6  ;;  %v796_v62 = vld [vmem:[#allocation7 + $0x278] sm:$0xff]  ;;  %v793_v6 = vld [vmem:[#allocation7 + $0x260] sm:$0xff] }
 0x1cc   :  { %v638_v10 = vrot.slane %v620_v7, 1  ;;  %v589_v11 = vpop.f32.mrb[6].mxu0  ;;  %v2217_v5 = vpack.c.bf16 %v796_v62, %v794_v61  ;;  %v821_v62 = vld [vmem:[#allocation7 + $0x340] sm:$0xff] }
 0x1cd   :  { %v666_v12 = vmax.f32 %v658_v8, 0.0  ;;  %v591_v13 = vpop.f32.mrb[7].mxu0 }
 0x1ce   :  { %v639_v14 = vsel %vm634_vm0, %v636_v3, %v638_v10  ;;  %v621_v15 = vmax.f32 %v589_v11, %v591_v13  ;;  %v800_v11 = vld [vmem:[#allocation7 + $0x298] sm:$0xff] }
 0x1cf   :  { %674 = vst [vmem:[#allocation2] sm:$0xff] %v666_v12  ;;  %v659_v16 = vmax.f32 %v619_v1, %v639_v14  ;;  %v2215_v1 = vpack.c.bf16 %v791_v59, %v789_v58  ;;  %v822_v58 = vld [vmem:[#allocation7 + $0x348] sm:$0xff]  ;;  %v824_v59 = vld [vmem:[#allocation7 + $0x358] sm:$0xff] }
 0x1d0   :  { %v640_v17 = vrot.slane %v621_v15, 1  ;;  %v595_v18 = vpop.f32.mrb[8].mxu0  ;;  %v2245_v61 = vpack.c.bf16 %v824_v59, %v822_v58  ;;  %v858_v58 = vld [vmem:[#allocation7 + $0x468] sm:$0xff]  ;;  %v860_v59 = vld [vmem:[#allocation7 + $0x478] sm:$0xff] }
 0x1d1   :  { %v2859_v19 = vmax.f32 %v659_v16, 0.0  ;;  %v597_v20 = vpop.f32.mrb[9].mxu0 }
 0x1d2   :  { %v641_v21 = vsel %vm634_vm0, %v638_v10, %v640_v17  ;;  %v622_v22 = vmax.f32 %v595_v18, %v597_v20  ;;  %v798_v10 = vld [vmem:[#allocation7 + $0x288] sm:$0xff]  ;;  %v799_v18 = vld [vmem:[#allocation7 + $0x290] sm:$0xff] }
 0x1d3   :  { %675 = vst [vmem:[#allocation2 + $0x8] sm:$0xff] %v2859_v19  ;;  %v660_v23 = vmax.f32 %v620_v7, %v641_v21  ;;  %v795_v7 = vld [vmem:[#allocation7 + $0x270] sm:$0xff]  ;;  %v2221_v16 = vpack.c.bf16 %v800_v11, %v798_v10  ;;  %v802_v20 = vld [vmem:[#allocation7 + $0x2a8] sm:$0xff]  ;;  %v804_v21 = vld [vmem:[#allocation7 + $0x2b8] sm:$0xff] }
 0x1d4   :  { %v642_v24 = vrot.slane %v622_v22, 1  ;;  %v601_v25 = vpop.f32.mrb[10].mxu0  ;;  %v2219_v14 = vpack.c.bf16 %v795_v7, %v793_v6  ;;  %v827_v6 = vld [vmem:[#allocation7 + $0x370] sm:$0xff]  ;;  %v830_v7 = vld [vmem:[#allocation7 + $0x388] sm:$0xff] }
 0x1d5   :  { %v2863_v26 = vmax.f32 %v660_v23, 0.0  ;;  %v603_v27 = vpop.f32.mrb[11].mxu0 }
 0x1d6   :  { %v643_v28 = vsel %vm634_vm0, %v640_v17, %v642_v24  ;;  %v623_v29 = vmax.f32 %v601_v25, %v603_v27  ;;  %v797_v17 = vld [vmem:[#allocation7 + $0x280] sm:$0xff]  ;;  %v803_v27 = vld [vmem:[#allocation7 + $0x2b0] sm:$0xff] }
 0x1d7   :  { %676 = vst [vmem:[#allocation2 + $0x10] sm:$0xff] %v2863_v26  ;;  %v661_v32 = vmax.f32 %v621_v15, %v643_v28  ;;  %v801_v25 = vld [vmem:[#allocation7 + $0x2a0] sm:$0xff]  ;;  %v806_v28 = vld [vmem:[#allocation7 + $0x2c8] sm:$0xff] }
 0x1d8   :  { %v644_v35 = vrot.slane %v623_v29, 1  ;;  %v607_v36 = vpop.f32.mrb[12].mxu0  ;;  %v2227_v30 = vpack.c.bf16 %v803_v27, %v801_v25  ;;  %v837_v27 = vld [vmem:[#allocation7 + $0x3c0] sm:$0xff] }
 0x1d9   :  { %v2867_v37 = vmax.f32 %v661_v32, 0.0  ;;  %v609_v38 = vpop.f32.mrb[13].mxu0 }
 0x1da   :  { %v645_v40 = vsel %vm634_vm0, %v642_v24, %v644_v35  ;;  %v624_v41 = vmax.f32 %v607_v36, %v609_v38  ;;  %v689_v42 = vld [vmem:[#allocation2 + $0x2] sm:$0xff]  ;;  %v2225_v24 = vpack.c.bf16 %v804_v21, %v802_v20  ;;  %v812_v36 = vld [vmem:[#allocation7 + $0x2f8] sm:$0xff]  ;;  %v833_v20 = vld [vmem:[#allocation7 + $0x3a0] sm:$0xff] }
 0x1db   :  { %677 = vst [vmem:[#allocation2 + $0x18] sm:$0xff] %v2867_v37  ;;  %v662_v46 = vmax.f32 %v622_v22, %v645_v40  ;;  %941 = vmatprep.mubr.f32.mxu1 %v689_v42  ;;  %v2223_v22 = vpack.c.bf16 %v799_v18, %v797_v17  ;;  %v811_v42 = vld [vmem:[#allocation7 + $0x2f0] sm:$0xff] }
 0x1dc   :  { %v646_v49 = vrot.slane %v624_v41, 1  ;;  %v613_v50 = vpop.f32.mrb[14].mxu0  ;;  %942 = vmatmul.mubr.f32.vlgmr.msra.gmra.mrb[0].mxu1 %v666_v12  ;;  %v835_v21 = vld [vmem:[#allocation7 + $0x3b0] sm:$0xff] }
 0x1dd   :  { %v2871_v51 = vmax.f32 %v662_v46, 0.0  ;;  %2208 = vmatpush1.bf16.msra.mxu1 %v2207_v39  ;;  %v615_v52 = vpop.f32.mrb[15].mxu0  ;;  %v2231_v39 = vpack.c.bf16 %v807_v34, %v805_v33  ;;  %v703_v46 = vld [vmem:[#allocation2 + $0x6] sm:$0xff]  ;;  %v841_v33 = vld [vmem:[#allocation7 + $0x3e0] sm:$0xff] }
 0x1de   :  { %v647_v54 = vsel %vm634_vm0, %v644_v35, %v646_v49  ;;  %v625_v55 = vmax.f32 %v613_v50, %v615_v52  ;;  %v690_v56 = vld [vmem:[#allocation2 + $0xa] sm:$0xff]  ;;  %2210 = vmatprep.subr.bf16.mxu1 %v2209_v43  ;;  %v810_v35 = vld [vmem:[#allocation7 + $0x2e8] sm:$0xff] }
 0x1df   :  { %678 = vst [vmem:[#allocation2 + $0x20] sm:$0xff] %v2871_v51  ;;  %v663_v60 = vmax.f32 %v623_v29, %v647_v54  ;;  %947 = vmatprep.mubr.f32.mxu1 %v690_v56  ;;  %v808_v29 = vld [vmem:[#allocation7 + $0x2d8] sm:$0xff]  ;;  %v2233_v40 = vpack.c.bf16 %v812_v36, %v810_v35  ;;  %v815_v50 = vld [vmem:[#allocation7 + $0x310] sm:$0xff]  ;;  %v818_v52 = vld [vmem:[#allocation7 + $0x328] sm:$0xff] }
 0x1e0   :  { %v648_v63 = vrot.slane %v625_v55, 1  ;;  %948 = vmatmul.mubr.f32.gmra.mrb[2].mxu1 %v2859_v19  ;;  %v2229_v32 = vpack.c.bf16 %v808_v29, %v806_v28  ;;  %v817_v56 = vld [vmem:[#allocation7 + $0x320] sm:$0xff]  ;;  %v839_v28 = vld [vmem:[#allocation7 + $0x3d0] sm:$0xff]  ;;  %v842_v29 = vld [vmem:[#allocation7 + $0x3e8] sm:$0xff] }
 0x1e1   :  { %v2876_v0 = vmax.f32 %v663_v60, 0.0  ;;  %2212 = vmatpush1.bf16.msra.mxu1 %v2211_v53  ;;  %v820_v53 = vld [vmem:[#allocation7 + $0x338] sm:$0xff]  ;;  %v843_v34 = vld [vmem:[#allocation7 + $0x3f0] sm:$0xff]  ;;  %v846_v35 = vld [vmem:[#allocation7 + $0x408] sm:$0xff] }
 0x1e2   :  { %v649_v2 = vsel %vm634_vm0, %v646_v49, %v648_v63  ;;  %v665_v3 = vmax.f32 %v625_v55, %v648_v63  ;;  %v691_v4 = vld [vmem:[#allocation2 + $0x12] sm:$0xff]  ;;  %2214 = vmatprep.subr.bf16.mxu1 %v2213_v57  ;;  %v2241_v55 = vpack.c.bf16 %v820_v53, %v818_v52  ;;  %v819_v57 = vld [vmem:[#allocation7 + $0x330] sm:$0xff] }
 0x1e3   :  { %679 = vst [vmem:[#allocation2 + $0x28] sm:$0xff] %v2876_v0  ;;  %v664_v8 = vmax.f32 %v624_v41, %v649_v2  ;;  %953 = vmatprep.mubr.f32.mxu1 %v691_v4  ;;  %v809_v41 = vld [vmem:[#allocation7 + $0x2e0] sm:$0xff]  ;;  %v2243_v60 = vpack.c.bf16 %v819_v57, %v817_v56  ;;  %v823_v63 = vld [vmem:[#allocation7 + $0x350] sm:$0xff]  ;;  %v828_v2 = vld [vmem:[#allocation7 + $0x378] sm:$0xff] }
 0x1e4   :  { %v673_v12 = vmax.f32 %v665_v3, 0.0  ;;  %954 = vmatmul.mubr.f32.gmra.mrb[4].mxu1 %v2863_v26  ;;  %v2235_v47 = vpack.c.bf16 %v811_v42, %v809_v41  ;;  %v813_v49 = vld [vmem:[#allocation7 + $0x300] sm:$0xff]  ;;  %v2247_v3 = vpack.c.bf16 %v823_v63, %v821_v62  ;;  %v848_v36 = vld [vmem:[#allocation7 + $0x418] sm:$0xff]  ;;  %v847_v41 = vld [vmem:[#allocation7 + $0x410] sm:$0xff]  ;;  %v2281_v62 = vpack.c.bf16 %v860_v59, %v858_v58 }
 0x1e5   :  { %v2881_v13 = vmax.f32 %v664_v8, 0.0  ;;  %2216 = vmatpush1.bf16.msra.mxu1 %v2215_v1  ;;  %v2239_v54 = vpack.c.bf16 %v815_v50, %v813_v49  ;;  %v826_v1 = vld [vmem:[#allocation7 + $0x368] sm:$0xff]  ;;  %v832_v8 = vld [vmem:[#allocation7 + $0x398] sm:$0xff]  ;;  %v855_v56 = vld [vmem:[#allocation7 + $0x450] sm:$0xff] }
 0x1e6   :  { %681 = vst [vmem:[#allocation2 + $0x38] sm:$0x7] %v673_v12  ;;  %v692_v15 = vld [vmem:[#allocation2 + $0x1a] sm:$0xff]  ;;  %2218 = vmatprep.subr.bf16.mxu1 %v2217_v5  ;;  %v2249_v4 = vpack.c.bf16 %v828_v2, %v826_v1  ;;  %v2253_v11 = vpack.c.bf16 %v832_v8, %v830_v7  ;;  %v856_v50 = vld [vmem:[#allocation7 + $0x458] sm:$0xff]  ;;  %v859_v1 = vld [vmem:[#allocation7 + $0x470] sm:$0xff] }
 0x1e7   :  { %680 = vst [vmem:[#allocation2 + $0x30] sm:$0xff] %v2881_v13  ;;  %959 = vmatprep.mubr.f32.mxu1 %v692_v15  ;;  %v825_v5 = vld [vmem:[#allocation7 + $0x360] sm:$0xff]  ;;  %v834_v15 = vld [vmem:[#allocation7 + $0x3a8] sm:$0xff]  ;;  %v704_v52 = vld [vmem:[#allocation2 + $0xe] sm:$0xff] }
 0x1e8   :  { %960 = vmatmul.mubr.f32.gmra.mrb[6].mxu1 %v2867_v37  ;;  %v2251_v10 = vpack.c.bf16 %v827_v6, %v825_v5  ;;  %v829_v12 = vld [vmem:[#allocation7 + $0x380] sm:$0xff]  ;;  %v850_v42 = vld [vmem:[#allocation7 + $0x428] sm:$0xff]  ;;  %v697_v57 = vld [vmem:[#allocation2 + $0xc] sm:$0xff] }
 0x1e9   :  { %2220 = vmatpush1.bf16.msra.mxu1 %v2219_v14  ;;  %v831_v14 = vld [vmem:[#allocation7 + $0x390] sm:$0xff]  ;;  %v854_v49 = vld [vmem:[#allocation7 + $0x448] sm:$0xff]  ;;  %v857_v63 = vld [vmem:[#allocation7 + $0x460] sm:$0xff] }
 0x1ea   :  { %v693_v23 = vld [vmem:[#allocation2 + $0x22] sm:$0xff]  ;;  %2222 = vmatprep.subr.bf16.mxu1 %v2221_v16  ;;  %v836_v16 = vld [vmem:[#allocation7 + $0x3b8] sm:$0xff]  ;;  %v2255_v17 = vpack.c.bf16 %v831_v14, %v829_v12  ;;  %v2283_v6 = vpack.c.bf16 %v859_v1, %v857_v63  ;;  %v861_v8 = vld [vmem:[#allocation7 + $0x480] sm:$0xff] }
 0x1eb   :  { %965 = vmatprep.mubr.f32.mxu1 %v693_v23  ;;  %v2257_v18 = vpack.c.bf16 %v836_v16, %v834_v15  ;;  %v840_v23 = vld [vmem:[#allocation7 + $0x3d8] sm:$0xff]  ;;  %v706_v5 = vld [vmem:[#allocation2 + $0x1e] sm:$0xff]  ;;  %v707_v15 = vld [vmem:[#allocation2 + $0x26] sm:$0xff] }
 0x1ec   :  { %966 = vmatmul.mubr.f32.gmra.mrb[8].mxu1 %v2871_v51  ;;  %v698_v2 = vld [vmem:[#allocation2 + $0x14] sm:$0xff]  ;;  %v866_v12 = vld [vmem:[#allocation7 + $0x4a8] sm:$0xff]  ;;  %v1307_v63 = vld [vmem:[#allocation9 + $0x110] sm:$0xff] }
 0x1ed   :  { %2224 = vmatpush1.bf16.msra.mxu1 %v2223_v22  ;;  %v838_v22 = vld [vmem:[#allocation7 + $0x3c8] sm:$0xff]  ;;  %v868_v14 = vld [vmem:[#allocation7 + $0x4b8] sm:$0xff]  ;;  %v1277_v58 = vld [vmem:[#allocation9 + $0x20] sm:$0xff] }
 0x1ee   :  { %v694_v31 = vld [vmem:[#allocation2 + $0x2a] sm:$0xff]  ;;  %2226 = vmatprep.subr.bf16.mxu1 %v2225_v24  ;;  %v695_v38 = vld [vmem:[#allocation2 + $0x32] sm:$0x7]  ;;  %v2259_v24 = vpack.c.bf16 %v835_v21, %v833_v20  ;;  %v2261_v25 = vpack.c.bf16 %v840_v23, %v838_v22  ;;  %v870_v22 = vld [vmem:[#allocation7 + $0x4c8] sm:$0xff] }
 0x1ef   :  { %971 = vmatprep.mubr.f32.mxu1 %v694_v31  ;;  %v688_v43 = vld [vmem:[#allocation2 + $0x30] sm:$0x7]  ;;  %v2263_v31 = vpack.c.bf16 %v839_v28, %v837_v27  ;;  %v867_v20 = vld [vmem:[#allocation7 + $0x4b0] sm:$0xff]  ;;  %v869_v28 = vld [vmem:[#allocation7 + $0x4c0] sm:$0xff] }
 0x1f0   :  { %972 = vmatmul.mubr.f32.gmra.mrb[10].mxu1 %v2876_v0  ;;  %v700_v21 = vld [vmem:[#allocation2 + $0x24] sm:$0xff]  ;;  %v872_v23 = vld [vmem:[#allocation7 + $0x4d8] sm:$0xff] }
 0x1f1   :  { %2228 = vmatpush1.bf16.msra.mxu1 %v2227_v30  ;;  %977 = vmatprep.mubr.f32.mxu1 %v695_v38  ;;  %v844_v30 = vld [vmem:[#allocation7 + $0x3f8] sm:$0xff]  ;;  %v2267_v38 = vpack.c.bf16 %v843_v34, %v841_v33  ;;  %v2293_v27 = vpack.c.bf16 %v872_v23, %v870_v22  ;;  %v1278_v59 = vld [vmem:[#allocation9 + $0x28] sm:$0xff]  ;;  %v1281_v22 = vld [vmem:[#allocation9 + $0x40] sm:$0xff] }
 0x1f2   :  { %2230 = vmatprep.subr.bf16.mxu1 %v2229_v32  ;;  %v2265_v32 = vpack.c.bf16 %v844_v30, %v842_v29  ;;  %v871_v29 = vld [vmem:[#allocation7 + $0x4d0] sm:$0xff]  ;;  %v709_v33 = vld [vmem:[#allocation2 + $0x36] sm:$0x7]  ;;  %v1282_v23 = vld [vmem:[#allocation9 + $0x48] sm:$0xff] }
 0x1f3   :  { %v701_v30 = vld [vmem:[#allocation2 + $0x2c] sm:$0xff]  ;;  %v2295_v34 = vpack.c.bf16 %v871_v29, %v869_v28 }
 0x1f4   :  { %978 = vmatmul.mubr.f32.gmra.mrb[12].mxu1 %v688_v43  ;;  %v852_v43 = vld [vmem:[#allocation7 + $0x438] sm:$0xff]  ;;  %v1311_v28 = vld [vmem:[#allocation9 + $0x130] sm:$0xff] }
 0x1f5   :  { %2232 = vmatpush1.bf16.msra.mxu1 %v2231_v39  ;;  %1048 = vmatprep.mubr.f32.mxu1 %v703_v46  ;;  %v2269_v39 = vpack.c.bf16 %v848_v36, %v846_v35  ;;  %v2273_v45 = vpack.c.bf16 %v852_v43, %v850_v42  ;;  %v849_v46 = vld [vmem:[#allocation7 + $0x420] sm:$0xff]  ;;  %v1274_v43 = vld [vmem:[#allocation9 + $0x8] sm:$0xff]  ;;  %v1308_v1 = vld [vmem:[#allocation9 + $0x118] sm:$0xff] }
 0x1f6   :  { %2234 = vmatprep.subr.bf16.mxu1 %v2233_v40  ;;  %v845_v40 = vld [vmem:[#allocation7 + $0x400] sm:$0xff]  ;;  %v1312_v29 = vld [vmem:[#allocation9 + $0x138] sm:$0xff] }
 0x1f7   :  { %v2271_v44 = vpack.c.bf16 %v847_v41, %v845_v40  ;;  %v873_v36 = vld [vmem:[#allocation7 + $0x4e0] sm:$0xff]  ;;  %v1290_v41 = vld [vmem:[#allocation9 + $0x88] sm:$0xff] }
 0x1f9   :  { %2236 = vmatpush1.bf16.msra.mxu1 %v2235_v47  ;;  %v851_v47 = vld [vmem:[#allocation7 + $0x430] sm:$0xff] }
 0x1fa   :  { %2238 = vmatprep.subr.bf16.mxu1 %v2237_v48  ;;  %v696_v48 = vld [vmem:[#allocation2 + $0x4] sm:$0xff]  ;;  %v2275_v53 = vpack.c.bf16 %v851_v47, %v849_v46  ;;  %v1276_v47 = vld [vmem:[#allocation9 + $0x18] sm:$0xff] }
 0x1fd   :  { %2240 = vmatpush1.bf16.msra.mxu1 %v2239_v54  ;;  %v2277_v54 = vpack.c.bf16 %v856_v50, %v854_v49  ;;  %v1305_v50 = vld [vmem:[#allocation9 + $0x100] sm:$0xff] }
 0x1fe   :  { %2242 = vmatprep.subr.bf16.mxu1 %v2241_v55  ;;  %v853_v55 = vld [vmem:[#allocation7 + $0x440] sm:$0xff] }
 0x201   :  { %2244 = vmatpush1.bf16.msra.mxu1 %v2243_v60  ;;  %v705_v60 = vld [vmem:[#allocation2 + $0x16] sm:$0xff] }
 0x202   :  { %2246 = vmatprep.subr.bf16.mxu1 %v2245_v61  ;;  %v2279_v61 = vpack.c.bf16 %v855_v56, %v853_v55  ;;  %v1293_v55 = vld [vmem:[#allocation9 + $0xa0] sm:$0xff]  ;;  %v1294_v56 = vld [vmem:[#allocation9 + $0xa8] sm:$0xff] }
 0x205   :  { %2248 = vmatpush1.bf16.msra.mxu1 %v2247_v3  ;;  %v862_v3 = vld [vmem:[#allocation7 + $0x488] sm:$0xff] }
 0x206   :  { %2250 = vmatprep.subr.bf16.mxu1 %v2249_v4  ;;  %v864_v4 = vld [vmem:[#allocation7 + $0x498] sm:$0xff] }
 0x207   :  { %v2285_v7 = vpack.c.bf16 %v864_v4, %v862_v3  ;;  %v2339_v3 = vpack.c.bf16 %v1308_v1, %v1307_v63  ;;  %v1295_v4 = vld [vmem:[#allocation9 + $0xb0] sm:$0xff] }
 0x208   :  { %v1335_v1 = vld [vmem:[#allocation9 + $0x1f0] sm:$0xff] }
 0x209   :  { %2252 = vmatpush1.bf16.msra.mxu1 %v2251_v10  ;;  %v863_v10 = vld [vmem:[#allocation7 + $0x490] sm:$0xff] }
 0x20a   :  { %2254 = vmatprep.subr.bf16.mxu1 %v2253_v11  ;;  %v699_v11 = vld [vmem:[#allocation2 + $0x1c] sm:$0xff]  ;;  %v2287_v16 = vpack.c.bf16 %v863_v10, %v861_v8  ;;  %v1280_v8 = vld [vmem:[#allocation9 + $0x38] sm:$0xff] }
 0x20b   :  { %v1325_v10 = vld [vmem:[#allocation9 + $0x1a0] sm:$0xff] }
 0x20d   :  { %2256 = vmatpush1.bf16.msra.mxu1 %v2255_v17  ;;  %v2289_v17 = vpack.c.bf16 %v868_v14, %v866_v12  ;;  %v1326_v12 = vld [vmem:[#allocation9 + $0x1a8] sm:$0xff]  ;;  %v1309_v14 = vld [vmem:[#allocation9 + $0x120] sm:$0xff] }
 0x20e   :  { %2258 = vmatprep.subr.bf16.mxu1 %v2257_v18  ;;  %v865_v18 = vld [vmem:[#allocation7 + $0x4a0] sm:$0xff] }
 0x211   :  { %2260 = vmatpush1.bf16.msra.mxu1 %v2259_v24  ;;  %v708_v24 = vld [vmem:[#allocation2 + $0x2e] sm:$0xff] }
 0x212   :  { %2262 = vmatprep.subr.bf16.mxu1 %v2261_v25  ;;  %v2291_v25 = vpack.c.bf16 %v867_v20, %v865_v18  ;;  %v1297_v18 = vld [vmem:[#allocation9 + $0xc0] sm:$0xff]  ;;  %v1298_v20 = vld [vmem:[#allocation9 + $0xc8] sm:$0xff] }
 0x215   :  { %2264 = vmatpush1.bf16.msra.mxu1 %v2263_v31  ;;  %v874_v31 = vld [vmem:[#allocation7 + $0x4e8] sm:$0xff] }
 0x216   :  { %2266 = vmatprep.subr.bf16.mxu1 %v2265_v32  ;;  %v876_v32 = vld [vmem:[#allocation7 + $0x4f8] sm:$0xff] }
 0x217   :  { %v2297_v35 = vpack.c.bf16 %v876_v32, %v874_v31  ;;  %v2347_v31 = vpack.c.bf16 %v1312_v29, %v1311_v28  ;;  %v1299_v32 = vld [vmem:[#allocation9 + $0xd0] sm:$0xff] }
 0x219   :  { %2268 = vmatpush1.bf16.msra.mxu1 %v2267_v38  ;;  %v875_v38 = vld [vmem:[#allocation7 + $0x4f0] sm:$0xff] }
 0x21a   :  { %2270 = vmatprep.subr.bf16.mxu1 %v2269_v39  ;;  %v702_v39 = vld [vmem:[#allocation2 + $0x34] sm:$0x7]  ;;  %v2299_v40 = vpack.c.bf16 %v875_v38, %v873_v36  ;;  %v1329_v38 = vld [vmem:[#allocation9 + $0x1c0] sm:$0xff] }
 0x21b   :  { %v1284_v36 = vld [vmem:[#allocation9 + $0x58] sm:$0xff] }
 0x21c   :  { %1049 = vmatmul.mubr.f32.vlgmr.msra.gmra.mrb[0].mxu1 %v696_v48  ;;  %v1321_v48 = vld [vmem:[#allocation9 + $0x180] sm:$0xff] }
 0x21d   :  { %1054 = vmatprep.mubr.f32.mxu1 %v704_v52  ;;  %2272 = vmatpush1.bf16.msra.mxu1 %v2271_v44  ;;  %v1306_v52 = vld [vmem:[#allocation9 + $0x108] sm:$0xff] }
 0x21e   :  { %2274 = vmatprep.subr.bf16.mxu1 %v2273_v45  ;;  %v1292_v45 = vld [vmem:[#allocation9 + $0x98] sm:$0xff] }
 0x220   :  { %1055 = vmatmul.mubr.f32.gmra.mrb[2].mxu1 %v697_v57  ;;  %v2309_v57 = vpack.c.bf16 %v1294_v56, %v1293_v55  ;;  %v1288_v56 = vld [vmem:[#allocation9 + $0x78] sm:$0xff] }
 0x221   :  { %1060 = vmatprep.mubr.f32.mxu1 %v705_v60  ;;  %2276 = vmatpush1.bf16.msra.mxu1 %v2275_v53  ;;  %v1323_v60 = vld [vmem:[#allocation9 + $0x190] sm:$0xff] }
 0x222   :  { %2278 = vmatprep.subr.bf16.mxu1 %v2277_v54  ;;  %v2335_v54 = vpack.c.bf16 %v1306_v52, %v1305_v50  ;;  %v1303_v52 = vld [vmem:[#allocation9 + $0xf0] sm:$0xff] }
 0x224   :  { %1061 = vmatmul.mubr.f32.gmra.mrb[4].mxu1 %v698_v2 }
 0x225   :  { %1066 = vmatprep.mubr.f32.mxu1 %v706_v5  ;;  %2280 = vmatpush1.bf16.msra.mxu1 %v2279_v61  ;;  %v2311_v61 = vpack.c.bf16 %v1278_v59, %v1277_v58  ;;  %v1296_v5 = vld [vmem:[#allocation9 + $0xb8] sm:$0xff]  ;;  %v1334_v58 = vld [vmem:[#allocation9 + $0x1e8] sm:$0xff] }
 0x226   :  { %2282 = vmatprep.subr.bf16.mxu1 %v2281_v62  ;;  %v1324_v62 = vld [vmem:[#allocation9 + $0x198] sm:$0xff] }
 0x227   :  { %v2337_v2 = vpack.c.bf16 %v1324_v62, %v1323_v60  ;;  %v1318_v62 = vld [vmem:[#allocation9 + $0x168] sm:$0xff] }
 0x228   :  { %1067 = vmatmul.mubr.f32.gmra.mrb[6].mxu1 %v699_v11 }
 0x229   :  { %1072 = vmatprep.mubr.f32.mxu1 %v707_v15  ;;  %2284 = vmatpush1.bf16.msra.mxu1 %v2283_v6  ;;  %v2313_v6 = vpack.c.bf16 %v1296_v5, %v1295_v4  ;;  %v1310_v15 = vld [vmem:[#allocation9 + $0x128] sm:$0xff]  ;;  %v1319_v4 = vld [vmem:[#allocation9 + $0x170] sm:$0xff]  ;;  %v1320_v5 = vld [vmem:[#allocation9 + $0x178] sm:$0xff] }
 0x22a   :  { %2286 = vmatprep.subr.bf16.mxu1 %v2285_v7  ;;  %v1279_v7 = vld [vmem:[#allocation9 + $0x30] sm:$0xff] }
 0x22b   :  { %v2315_v11 = vpack.c.bf16 %v1280_v8, %v1279_v7  ;;  %v2363_v7 = vpack.c.bf16 %v1320_v5, %v1319_v4 }
 0x22c   :  { %1073 = vmatmul.mubr.f32.gmra.mrb[8].mxu1 %v700_v21  ;;  %v2317_v21 = vpack.c.bf16 %v1298_v20, %v1297_v18 }
 0x22d   :  { %1078 = vmatprep.mubr.f32.mxu1 %v708_v24  ;;  %2288 = vmatpush1.bf16.msra.mxu1 %v2287_v16  ;;  %v2341_v16 = vpack.c.bf16 %v1326_v12, %v1325_v10  ;;  %v1327_v24 = vld [vmem:[#allocation9 + $0x1b0] sm:$0xff] }
 0x22e   :  { %2290 = vmatprep.subr.bf16.mxu1 %v2289_v17  ;;  %v2343_v17 = vpack.c.bf16 %v1310_v15, %v1309_v14 }
 0x230   :  { %1079 = vmatmul.mubr.f32.gmra.mrb[10].mxu1 %v701_v30 }
 0x231   :  { %1084 = vmatprep.mubr.f32.mxu1 %v709_v33  ;;  %2292 = vmatpush1.bf16.msra.mxu1 %v2291_v25  ;;  %v2319_v25 = vpack.c.bf16 %v1282_v23, %v1281_v22  ;;  %v1300_v33 = vld [vmem:[#allocation9 + $0xd8] sm:$0xff] }
 0x232   :  { %2294 = vmatprep.subr.bf16.mxu1 %v2293_v27  ;;  %v1328_v27 = vld [vmem:[#allocation9 + $0x1b8] sm:$0xff] }
 0x233   :  { %v2345_v30 = vpack.c.bf16 %v1328_v27, %v1327_v24 }
 0x234   :  { %1085 = vmatmul.mubr.f32.gmra.mrb[12].mxu1 %v702_v39 }
 0x235   :  { %2296 = vmatpush1.bf16.msra.mxu1 %v2295_v34  ;;  %1155 = vmatprep.mubr.f32.mxu1 %v2635_v9  ;;  %v2321_v34 = vpack.c.bf16 %v1300_v33, %v1299_v32 }
 0x236   :  { %2298 = vmatprep.subr.bf16.mxu1 %v2297_v35  ;;  %v1283_v35 = vld [vmem:[#allocation9 + $0x50] sm:$0xff] }
 0x237   :  { %v2323_v39 = vpack.c.bf16 %v1284_v36, %v1283_v35 }
 0x239   :  { %2300 = vmatpush1.bf16.msra.mxu1 %v2299_v40  ;;  %v1330_v40 = vld [vmem:[#allocation9 + $0x1c8] sm:$0xff] }
 0x23c   :  { %1156 = vmatmul.mubr.f32.vlgmr.msra.gmra.mrb[0].mxu1 %v2859_v19  ;;  %v716_v19 = vld [vmem:[#allocation2 + $0x38] sm:$0x7] }
 0x23d   :  { %1161 = vmatprep.mubr.f32.mxu1 %v2635_v9 }
 0x240   :  { %1162 = vmatmul.mubr.f32.gmra.mrb[2].mxu1 %v2863_v26  ;;  %v1289_v26 = vld [vmem:[#allocation9 + $0x80] sm:$0xff] }
 0x241   :  { %1167 = vmatprep.mubr.f32.mxu1 %v2635_v9  ;;  %v2301_v42 = vpack.c.bf16 %v1290_v41, %v1289_v26  ;;  %v1314_v26 = vld [vmem:[#allocation9 + $0x148] sm:$0xff]  ;;  %v2349_v41 = vpack.c.bf16 %v1330_v40, %v1329_v38 }
 0x243   :  { %2302 = vmatprep.subr.bf16.mxu0 %v2301_v42 }
 0x244   :  { %1168 = vmatmul.mubr.f32.gmra.mrb[4].mxu1 %v2867_v37  ;;  %v1273_v37 = vld [vmem:[#allocation9] sm:$0xff] }
 0x245   :  { %1173 = vmatprep.mubr.f32.mxu1 %v2635_v9  ;;  %v2303_v44 = vpack.c.bf16 %v1274_v43, %v1273_v37  ;;  %v1301_v37 = vld [vmem:[#allocation9 + $0xe0] sm:$0xff]  ;;  %v1302_v43 = vld [vmem:[#allocation9 + $0xe8] sm:$0xff] }
 0x247   :  { %2304 = vmatpush3.bf16.msra.mxu0 %v2303_v44  ;;  %v2325_v44 = vpack.c.bf16 %v1302_v43, %v1301_v37 }
 0x248   :  { %1174 = vmatmul.mubr.f32.gmra.mrb[6].mxu1 %v2871_v51  ;;  %v1291_v51 = vld [vmem:[#allocation9 + $0x90] sm:$0xff] }
 0x249   :  { %1179 = vmatprep.mubr.f32.mxu1 %v2635_v9  ;;  %v2305_v46 = vpack.c.bf16 %v1292_v45, %v1291_v51  ;;  %v1285_v51 = vld [vmem:[#allocation9 + $0x60] sm:$0xff]  ;;  %v1286_v45 = vld [vmem:[#allocation9 + $0x68] sm:$0xff] }
 0x24b   :  { %2306 = vmatprep.subr.bf16.mxu0 %v2305_v46  ;;  %v1331_v46 = vld [vmem:[#allocation9 + $0x1d0] sm:$0xff] }
 0x24c   :  { %1180 = vmatmul.mubr.f32.gmra.mrb[8].mxu1 %v2876_v0  ;;  %v1275_v0 = vld [vmem:[#allocation9 + $0x10] sm:$0xff] }
 0x24d   :  { %1185 = vmatprep.mubr.f32.mxu1 %v2635_v9  ;;  %v2307_v49 = vpack.c.bf16 %v1276_v47, %v1275_v0  ;;  %v2327_v0 = vpack.c.bf16 %v1286_v45, %v1285_v51  ;;  %v1332_v47 = vld [vmem:[#allocation9 + $0x1d8] sm:$0xff] }
 0x24f   :  { %2308 = vmatpush3.bf16.msra.mxu0 %v2307_v49  ;;  %v1316_v49 = vld [vmem:[#allocation9 + $0x158] sm:$0xff] }
 0x250   :  { %1186 = vmatmul.mubr.f32.gmra.mrb[10].mxu1 %v2881_v13  ;;  %v1322_v13 = vld [vmem:[#allocation9 + $0x188] sm:$0xff]  ;;  %2310 = vmatprep.subr.bf16.mxu0 %v2309_v57  ;;  %v1333_v57 = vld [vmem:[#allocation9 + $0x1e0] sm:$0xff] }
 0x251   :  { %1191 = vmatprep.mubr.f32.mxu1 %v2635_v9  ;;  %v2333_v53 = vpack.c.bf16 %v1322_v13, %v1321_v48  ;;  %v1315_v48 = vld [vmem:[#allocation9 + $0x150] sm:$0xff]  ;;  %v2353_v13 = vpack.c.bf16 %v1332_v47, %v1331_v46  ;;  %v2357_v60 = vpack.c.bf16 %v1334_v58, %v1333_v57 }
 0x252   :  { %v2355_v50 = vpack.c.bf16 %v1316_v49, %v1315_v48 }
 0x253   :  { %2334 = vmatprep.subr.bf16.mxu1 %v2333_v53  ;;  %2312 = vmatpush3.bf16.msra.mxu0 %v2311_v61  ;;  %v1304_v53 = vld [vmem:[#allocation9 + $0xf8] sm:$0xff]  ;;  %v1317_v61 = vld [vmem:[#allocation9 + $0x160] sm:$0xff] }
 0x254   :  { %1192 = vmatmul.mubr.f32.gmra.mrb[12].mxu1 %v716_v19  ;;  %2314 = vmatprep.subr.bf16.mxu0 %v2313_v6  ;;  %v1313_v19 = vld [vmem:[#allocation9 + $0x140] sm:$0xff]  ;;  %v2329_v55 = vpack.c.bf16 %v1304_v53, %v1303_v52  ;;  %v2359_v63 = vpack.c.bf16 %v1318_v62, %v1317_v61  ;;  %v2636_v6 = vmov 0.0|0.0   ;;  %v1339_v62 = vld [vmem:[#allocation9 + $0x210] sm:$0xff] }
 0x255   :  { %2336 = vmatpush3.bf16.msra.mxu1 %v2335_v54  ;;  %v2351_v42 = vpack.c.bf16 %v1314_v26, %v1313_v19  ;;  %v1287_v54 = vld [vmem:[#allocation9 + $0x70] sm:$0xff]  ;;  %v1337_v53 = vld [vmem:[#allocation9 + $0x200] sm:$0xff] }
 0x256   :  { %2338 = vmatprep.subr.bf16.mxu1 %v2337_v2  ;;  %v2331_v59 = vpack.c.bf16 %v1288_v56, %v1287_v54  ;;  %v1336_v2 = vld [vmem:[#allocation9 + $0x1f8] sm:$0xff]  ;;  %v1338_v54 = vld [vmem:[#allocation9 + $0x208] sm:$0xff] }
 0x257   :  { %2316 = vmatpush3.bf16.msra.mxu0 %v2315_v11  ;;  %v2366_v61 = vpack.c.bf16 %v1338_v54, %v1337_v53  ;;  %v1651_v53 = vld [vmem:[#allocation10] sm:$0xff]  ;;  %v1652_v54 = vld [vmem:[#allocation10 + $0x8] sm:$0xff] }
 0x258   :  { %2318 = vmatprep.subr.bf16.mxu0 %v2317_v21 }
 0x259   :  { %2340 = vmatpush3.bf16.msra.mxu1 %v2339_v3  ;;  %v2361_v3 = vpack.c.bf16 %v1336_v2, %v1335_v1 }
 0x25a   :  { %2342 = vmatprep.subr.bf16.mxu1 %v2341_v16 }
 0x25b   :  { %2320 = vmatpush3.bf16.msra.mxu0 %v2319_v25 }
 0x25c   :  { %2322 = vmatprep.subr.bf16.mxu0 %v2321_v34 }
 0x25d   :  { %2344 = vmatpush3.bf16.msra.mxu1 %v2343_v17 }
 0x25e   :  { %2346 = vmatprep.subr.bf16.mxu1 %v2345_v30 }
 0x25f   :  { %2324 = vmatpush3.bf16.msra.mxu0 %v2323_v39 }
 0x260   :  { %2326 = vmatprep.subr.bf16.mxu0 %v2325_v44 }
 0x261   :  { %2348 = vmatpush3.bf16.msra.mxu1 %v2347_v31 }
 0x262   :  { %2350 = vmatprep.subr.bf16.mxu1 %v2349_v41 }
 0x263   :  { %2328 = vmatpush3.bf16.msra.mxu0 %v2327_v0 }
 0x264   :  { %2330 = vmatprep.subr.bf16.mxu0 %v2329_v55 }
 0x265   :  { %2352 = vmatpush3.bf16.msra.mxu1 %v2351_v42 }
 0x266   :  { %2354 = vmatprep.subr.bf16.mxu1 %v2353_v13 }
 0x267   :  { %2332 = vmatpush3.bf16.msra.mxu0 %v2331_v59 }
 0x268   :  { %2365 = vmatprep.subr.bf16.mxu0 %v2636_v6 }
 0x269   :  { %2356 = vmatpush3.bf16.msra.mxu1 %v2355_v50 }
 0x26a   :  { %2358 = vmatprep.subr.bf16.mxu1 %v2357_v60 }
 0x26d   :  { %2360 = vmatpush3.bf16.msra.mxu1 %v2359_v63  ;;  %v1340_v63 = vld [vmem:[#allocation9 + $0x218] sm:$0xff] }
 0x26e   :  { %2362 = vmatprep.subr.bf16.mxu1 %v2361_v3 }
 0x271   :  { %2364 = vmatpush3.bf16.msra.mxu1 %v2363_v7 }
 0x272   :  { %2389 = vmatprep.subr.bf16.mxu1 %v2636_v6 }
 0x30f   :  { %v1157_v8 = vpop.f32.mrb[0].mxu1 }
 0x310   :  { %v1159_v10 = vpop.f32.mrb[1].mxu1 }
 0x311   :  { %v1198_v11 = vmax.f32 %v1157_v8, %v1159_v10  ;;  %v2369_v8 = vpack.c.bf16 %v1340_v63, %v1339_v62  ;;  %v1341_v10 = vld [vmem:[#allocation9 + $0x220] sm:$0xff]  ;;  %v1657_v62 = vld [vmem:[#allocation10 + $0x30] sm:$0xff]  ;;  %v1658_v63 = vld [vmem:[#allocation10 + $0x38] sm:$0xff] }
 0x313   :  { %v1163_v12 = vpop.f32.mrb[2].mxu1  ;;  %v1213_v16 = vrot.slane %v1198_v11, 2 }
 0x314   :  { %v1165_v14 = vpop.f32.mrb[3].mxu1 }
 0x315   :  { %v1199_v15 = vmax.f32 %v1163_v12, %v1165_v14  ;;  %v1343_v14 = vld [vmem:[#allocation9 + $0x230] sm:$0xff] }
 0x317   :  { %v1214_v17 = vrot.slane %v1199_v15, 2  ;;  %v1169_v18 = vpop.f32.mrb[4].mxu1 }
 0x318   :  { %v1171_v20 = vpop.f32.mrb[5].mxu1 }
 0x319   :  { %v1215_v21 = vsel %vm1212_vm1, %v1213_v16, %v1214_v17  ;;  %v1200_v22 = vmax.f32 %v1169_v18, %v1171_v20  ;;  %v1346_v18 = vld [vmem:[#allocation9 + $0x248] sm:$0xff] }
 0x31a   :  { %v1233_v23 = vmax.f32 %v1198_v11, %v1215_v21  ;;  %v1342_v11 = vld [vmem:[#allocation9 + $0x228] sm:$0xff]  ;;  %v1347_v21 = vld [vmem:[#allocation9 + $0x250] sm:$0xff] }
 0x31b   :  { %v1216_v24 = vrot.slane %v1200_v22, 2  ;;  %v1175_v25 = vpop.f32.mrb[6].mxu1  ;;  %v2372_v12 = vpack.c.bf16 %v1342_v11, %v1341_v10  ;;  %v1663_v10 = vld [vmem:[#allocation10 + $0x60] sm:$0xff]  ;;  %v1664_v11 = vld [vmem:[#allocation10 + $0x68] sm:$0xff] }
 0x31c   :  { %v1240_v27 = vmax.f32 %v1233_v23, 0.0  ;;  %v1177_v28 = vpop.f32.mrb[7].mxu1 }
 0x31d   :  { %v1217_v29 = vsel %vm1212_vm1, %v1214_v17, %v1216_v24  ;;  %v1201_v30 = vmax.f32 %v1175_v25, %v1177_v28  ;;  %v1345_v17 = vld [vmem:[#allocation9 + $0x240] sm:$0xff]  ;;  %v1350_v25 = vld [vmem:[#allocation9 + $0x268] sm:$0xff]  ;;  %v1351_v28 = vld [vmem:[#allocation9 + $0x270] sm:$0xff] }
 0x31e   :  { %1247 = vst [vmem:[#allocation3] sm:$0xff] %v1240_v27  ;;  %v1234_v31 = vmax.f32 %v1199_v15, %v1217_v29  ;;  %v1344_v15 = vld [vmem:[#allocation9 + $0x238] sm:$0xff]  ;;  %v2378_v20 = vpack.c.bf16 %v1346_v18, %v1345_v17 }
 0x31f   :  { %v1218_v32 = vrot.slane %v1201_v30, 2  ;;  %v1181_v33 = vpop.f32.mrb[8].mxu1  ;;  %v2375_v16 = vpack.c.bf16 %v1344_v15, %v1343_v14  ;;  %v1352_v29 = vld [vmem:[#allocation9 + $0x278] sm:$0xff] }
 0x320   :  { %v1241_v34 = vmax.f32 %v1234_v31, 0.0  ;;  %v1183_v35 = vpop.f32.mrb[9].mxu1  ;;  %v2387_v30 = vpack.c.bf16 %v1352_v29, %v1351_v28  ;;  %v1666_v28 = vld [vmem:[#allocation10 + $0x78] sm:$0xff] }
 0x321   :  { %v1219_v36 = vsel %vm1212_vm1, %v1216_v24, %v1218_v32  ;;  %v1202_v38 = vmax.f32 %v1181_v33, %v1183_v35  ;;  %v1349_v24 = vld [vmem:[#allocation9 + $0x260] sm:$0xff]  ;;  %v1565_v35 = vld [vmem:[%s2999_s4 + $0x8] sm:$0xff] }
 0x322   :  { %1248 = vst [vmem:[#allocation3 + $0x8] sm:$0xff] %v1241_v34  ;;  %v1235_v39 = vmax.f32 %v1200_v22, %v1219_v36  ;;  %v1348_v22 = vld [vmem:[#allocation9 + $0x258] sm:$0xff]  ;;  %v2384_v27 = vpack.c.bf16 %v1350_v25, %v1349_v24  ;;  %v1564_v34 = vld [vmem:[%s2999_s4] sm:$0xff] }
 0x323   :  { %v1220_v40 = vrot.slane %v1202_v38, 2  ;;  %v1187_v19 = vpop.f32.mrb[10].mxu1  ;;  %v2381_v23 = vpack.c.bf16 %v1348_v22, %v1347_v21  ;;  %v2390_v36 = vpack.c.bf16 %v1565_v35, %v1564_v34 }
 0x324   :  { %v1242_v26 = vmax.f32 %v1235_v39, 0.0  ;;  %v1189_v41 = vpop.f32.mrb[11].mxu1  ;;  %v1567_v39 = vld [vmem:[%s2999_s4 + $0x18] sm:$0xff] }
 0x325   :  { %v1203_v42 = vmax.f32 %v1187_v19, %v1189_v41  ;;  %v1258_v55 = vld [vmem:[#allocation3 + $0x4] ss:$32 sm:$0x1]  ;;  %v1254_v56 = vld [vmem:[#allocation3] ss:$32 sm:$0x1] }
 0x326   :  { %1249 = vst [vmem:[#allocation3 + $0x10] sm:$0xff] %v1242_v26  ;;  %v1569_v19 = vld [vmem:[%s2999_s4 + $0x28] sm:$0xff]  ;;  %v1570_v41 = vld [vmem:[%s2999_s4 + $0x30] sm:$0xff] }
 0x327   :  { %v1222_v37 = vrot.slane %v1203_v42, 2  ;;  %v1193_v43 = vpop.f32.mrb[12].mxu1 }
 0x328   :  { %v1195_v44 = vpop.f32.mrb[13].mxu1 }
 0x329   :  { %v1223_v51 = vsel %vm1212_vm1, %v1220_v40, %v1222_v37  ;;  %v1204_v45 = vmax.f32 %v1193_v43, %v1195_v44  ;;  %v1266_v1 = vld [vmem:[#allocation3 + $0xc] ss:$32 sm:$0x1]  ;;  %v1262_v2 = vld [vmem:[#allocation3 + $0x8] ss:$32 sm:$0x1] }
 0x32a   :  { %v1237_v46 = vmax.f32 %v1202_v38, %v1223_v51  ;;  %v1566_v38 = vld [vmem:[%s2999_s4 + $0x10] sm:$0xff]  ;;  %v1568_v40 = vld [vmem:[%s2999_s4 + $0x20] sm:$0xff]  ;;  %v1573_v44 = vld [vmem:[%s2999_s4 + $0x48] sm:$0xff] }
 0x32b   :  { %v1224_v0 = vrot.slane %v1204_v45, 2  ;;  %v2396_v26 = vpack.c.bf16 %v1569_v19, %v1568_v40  ;;  %v1572_v43 = vld [vmem:[%s2999_s4 + $0x40] sm:$0xff] }
 0x32c   :  { %v1244_v47 = vmax.f32 %v1237_v46, 0.0  ;;  %v2402_v51 = vpack.c.bf16 %v1573_v44, %v1572_v43  ;;  %v1575_v46 = vld [vmem:[%s2999_s4 + $0x58] sm:$0xff] }
 0x32d   :  { %v1225_v48 = vsel %vm1212_vm1, %v1222_v37, %v1224_v0  ;;  %v1239_v49 = vmax.f32 %v1204_v45, %v1224_v0  ;;  %v1270_v32 = vld [vmem:[#allocation3 + $0x10] ss:$32 sm:$0x1] }
 0x32e   :  { %1251 = vst [vmem:[#allocation3 + $0x20] sm:$0xff] %v1244_v47  ;;  %v1238_v13 = vmax.f32 %v1203_v42, %v1225_v48  ;;  %v1571_v42 = vld [vmem:[%s2999_s4 + $0x38] sm:$0xff]  ;;  %v1574_v45 = vld [vmem:[%s2999_s4 + $0x50] sm:$0xff]  ;;  %v1576_v47 = vld [vmem:[%s2999_s4 + $0x60] sm:$0xff] }
 0x32f   :  { %v1246_v50 = vmax.f32 %v1239_v49, 0.0  ;;  %v2399_v37 = vpack.c.bf16 %v1571_v42, %v1570_v41  ;;  %v2405_v0 = vpack.c.bf16 %v1575_v46, %v1574_v45  ;;  %v1577_v48 = vld [vmem:[%s2999_s4 + $0x68] sm:$0xff] }
 0x330   :  { %v1245_v52 = vmax.f32 %v1238_v13, 0.0  ;;  %v2408_v49 = vpack.c.bf16 %v1577_v48, %v1576_v47  ;;  %v1578_v13 = vld [vmem:[%s2999_s4 + $0x70] sm:$0xff] }
 0x331   :  { %1253 = vst [vmem:[#allocation3 + $0x30] sm:$0x1] %v1246_v50  ;;  %v1579_v50 = vld [vmem:[%s2999_s4 + $0x78] sm:$0xff]  ;;  %s2638_s4 = smov [#allocation12]  }
 0x332   :  { %1252 = vst [vmem:[#allocation3 + $0x28] sm:$0xff] %v1245_v52  ;;  %v2411_v52 = vpack.c.bf16 %v1579_v50, %v1578_v13  ;;  %s1744_s3 = sshll.u32 %s2638_s4, 4  ;;  %s1745_s3 = int_to_ptr.vmem [resolvable:$true] %s1744_s3 }
 0x333   :  { %s2597_s2 = scalar_lea.vmem %s1745_s3, 32  ;;  %p2602_p5 = scmp.lt.s32.totalorder %s1745_s3, %s1745_s3 }
 0x334   :  { %p2598_p4 = scmp.ne.s32.totalorder %s1745_s3, %s2597_s2  ;;  %p2603_p6 = scmp.lt.s32.totalorder %s2597_s2, %s2597_s2 }
 0x335   :  { %v1259_v57 = vld [vmem:[#allocation3 + $0x4] ss:$32 sm:$0x2]  ;;  %v1255_v58 = vld [vmem:[#allocation3] ss:$32 sm:$0x2] }
 0x336   :  { %v1260_v59 = vor.u32 %v1259_v57, %v1258_v55  ;;  %v1256_v60 = vor.u32 %v1255_v58, %v1254_v56  ;;  %v1653_v55 = vld [vmem:[#allocation10 + $0x10] sm:$0xff]  ;;  %v2414_v56 = vpack.c.bf16 %v1652_v54, %v1651_v53  ;;  %v1654_v57 = vld [vmem:[#allocation10 + $0x18] sm:$0xff]  ;;  %p2604_p7 = por %p2603_p6, %p2602_p5 }
 0x337   :  { %v2417_v58 = vpack.c.bf16 %v1654_v57, %v1653_v55 }
 0x338   :  { %1417 = vmatprep.mubr.f32.mxu0 %v1260_v59  ;;  %v1271_v31 = vld [vmem:[#allocation3 + $0x10] ss:$32 sm:$0x2]  ;;  %v1655_v59 = vld [vmem:[#allocation10 + $0x20] sm:$0xff]  ;;  %p2605_p8 = pnand %p2604_p7, %p2598_p4 }
 0x339   :  { %1418 = vmatmul.mubr.f32.vlgmr.msra.gmra.mrb[16].mxu0 %v1256_v60  ;;  %v1267_v3 = vld [vmem:[#allocation3 + $0xc] ss:$32 sm:$0x2]  ;;  %v1263_v4 = vld [vmem:[#allocation3 + $0x8] ss:$32 sm:$0x2]  ;;  %v1272_v33 = vor.u32 %v1271_v31, %v1270_v32 }
 0x33a   :  { %2367 = vmatpush3.bf16.msra.mxu0 %v2366_v61  ;;  %v1268_v5 = vor.u32 %v1267_v3, %v1266_v1  ;;  %v1264_v7 = vor.u32 %v1263_v4, %v1262_v2  ;;  %1908 = vmatprep.mubr.msk.f32.mxu0 %vm2637_vm2, %v2635_v9  ;;  %v1656_v60 = vld [vmem:[#allocation10 + $0x28] sm:$0xff]  ;;  %v2423_v1 = vpack.c.bf16 %v1658_v63, %v1657_v62  ;;  %v1659_v2 = vld [vmem:[#allocation10 + $0x40] sm:$0xff] }
 0x33b   :  { %2368 = vmatprep.subr.bf16.mxu0 %v2636_v6  ;;  %v2420_v61 = vpack.c.bf16 %v1656_v60, %v1655_v59  ;;  %v1660_v3 = vld [vmem:[#allocation10 + $0x48] sm:$0xff] }
 0x33c   :  { %1487 = vmatprep.mubr.f32.mxu1 %v1268_v5  ;;  %v2426_v4 = vpack.c.bf16 %v1660_v3, %v1659_v2  ;;  %v1661_v5 = vld [vmem:[#allocation10 + $0x50] sm:$0xff] }
 0x33d   :  { %1488 = vmatmul.mubr.f32.vlgmr.msra.gmra.mrb[14].mxu1 %v1264_v7  ;;  %v1662_v7 = vld [vmem:[#allocation10 + $0x58] sm:$0xff] }
 0x33e   :  { %2370 = vmatpush3.bf16.msra.mxu0 %v2369_v8  ;;  %1943 = vmatprep.mubr.msk.f32.mxu1 %vm2637_vm2, %v2635_v9  ;;  %v2429_v8 = vpack.c.bf16 %v1662_v7, %v1661_v5 }
 0x33f   :  { %2371 = vmatprep.subr.bf16.mxu0 %v2636_v6  ;;  %2391 = vmatpush3.bf16.msra.mxu1 %v2390_v36 }
 0x340   :  { %2392 = vmatprep.subr.bf16.mxu1 %v2636_v6 }
 0x342   :  { %2373 = vmatpush3.bf16.msra.mxu0 %v2372_v12  ;;  %v2432_v12 = vpack.c.bf16 %v1664_v11, %v1663_v10 }
 0x343   :  { %2374 = vmatprep.subr.bf16.mxu0 %v2636_v6 }
 0x346   :  { %2376 = vmatpush3.bf16.msra.mxu0 %v2375_v16 }
 0x347   :  { %2377 = vmatprep.subr.bf16.mxu0 %v2636_v6 }
 0x34a   :  { %2379 = vmatpush3.bf16.msra.mxu0 %v2378_v20 }
 0x34b   :  { %2380 = vmatprep.subr.bf16.mxu0 %v2636_v6 }
 0x34e   :  { %2382 = vmatpush3.bf16.msra.mxu0 %v2381_v23 }
 0x34f   :  { %2383 = vmatprep.subr.bf16.mxu0 %v2636_v6 }
 0x352   :  { %2385 = vmatpush3.bf16.msra.mxu0 %v2384_v27  ;;  %v1665_v27 = vld [vmem:[#allocation10 + $0x70] sm:$0xff] }
 0x353   :  { %2386 = vmatprep.subr.bf16.mxu0 %v2636_v6  ;;  %v2435_v29 = vpack.c.bf16 %v1666_v28, %v1665_v27 }
 0x356   :  { %2388 = vmatpush3.bf16.msra.mxu0 %v2387_v30 }
 0x357   :  { %2413 = vmatprep.subr.bf16.mxu0 %v2636_v6 }
 0x359   :  { %1909 = vmatmul.mubr.f32.vlgmr.msra.gmra.mrb[18].mxu0 %v1272_v33 }
 0x35a   :  { %1978 = vmatprep.mubr.msk.f32.mxu0 %vm2637_vm2, %v2635_v9  ;;  %v2393_v9 = vpack.c.bf16 %v1567_v39, %v1566_v38  ;;  %2415 = vmatpush3.bf16.msra.mxu0 %v2414_v56 }
 0x35b   :  { %2416 = vmatprep.subr.bf16.mxu0 %v2636_v6 }
 0x35c   :  { %2394 = vmatpush3.bf16.msra.mxu1 %v2393_v9 }
 0x35d   :  { %2395 = vmatprep.subr.bf16.mxu1 %v2636_v6 }
 0x35e   :  { %2418 = vmatpush3.bf16.msra.mxu0 %v2417_v58 }
 0x35f   :  { %2419 = vmatprep.subr.bf16.mxu0 %v2636_v6 }
 0x360   :  { %2397 = vmatpush3.bf16.msra.mxu1 %v2396_v26 }
 0x361   :  { %2398 = vmatprep.subr.bf16.mxu1 %v2636_v6 }
 0x362   :  { %2421 = vmatpush3.bf16.msra.mxu0 %v2420_v61 }
 0x363   :  { %2422 = vmatprep.subr.bf16.mxu0 %v2636_v6 }
 0x364   :  { %2400 = vmatpush3.bf16.msra.mxu1 %v2399_v37 }
 0x365   :  { %2401 = vmatprep.subr.bf16.mxu1 %v2636_v6 }
 0x366   :  { %2424 = vmatpush3.bf16.msra.mxu0 %v2423_v1 }
 0x367   :  { %2425 = vmatprep.subr.bf16.mxu0 %v2636_v6 }
 0x368   :  { %2403 = vmatpush3.bf16.msra.mxu1 %v2402_v51 }
 0x369   :  { %2404 = vmatprep.subr.bf16.mxu1 %v2636_v6 }
 0x36a   :  { %2427 = vmatpush3.bf16.msra.mxu0 %v2426_v4 }
 0x36b   :  { %2428 = vmatprep.subr.bf16.mxu0 %v2636_v6 }
 0x36c   :  { %2406 = vmatpush3.bf16.msra.mxu1 %v2405_v0 }
 0x36d   :  { %2407 = vmatprep.subr.bf16.mxu1 %v2636_v6 }
 0x36e   :  { %2430 = vmatpush3.bf16.msra.mxu0 %v2429_v8 }
 0x36f   :  { %2431 = vmatprep.subr.bf16.mxu0 %v2636_v6 }
 0x370   :  { %2409 = vmatpush3.bf16.msra.mxu1 %v2408_v49 }
 0x371   :  { %2410 = vmatprep.subr.bf16.mxu1 %v2636_v6 }
 0x372   :  { %2433 = vmatpush3.bf16.msra.mxu0 %v2432_v12 }
 0x373   :  { %2434 = vmatprep.subr.bf16.mxu0 %v2636_v6 }
 0x374   :  { %2412 = vmatpush3.bf16.msra.mxu1 %v2411_v52 }
 0x376   :  { %2436 = vmatpush3.bf16.msra.mxu0 %v2435_v29 }
 0x40c   :  { %v1787_v14 = vpop.f32.mrb[16].mxu0 }
 0x40d   :  { %v1788_v15 = vpop.f32.mrb[17].mxu0 }
 0x40e   :  { %v1789_v16 = vadd.f32 %v1788_v15, %v1787_v14 }
 0x410   :  { %v1822_v17 = vpop.f32.mrb[14].mxu1 }
 0x411   :  { %v1823_v18 = vpop.f32.mrb[15].mxu1 }
 0x412   :  { %v1824_v20 = vadd.f32 %v1823_v18, %v1822_v17 }
 0x414   :  { %v1490_v21 = vadd.f32 %v1824_v20, %v1789_v16 }
 0x42c   :  { %v1559_v22 = vpop.f32.mrb[18].mxu0 }
 0x42d   :  { %v1560_v23 = vadd.f32 %v1559_v22, %v1490_v21  ;;  %v1910_v24 = vpop.f32.mrb[19].mxu0 }
 0x42f   :  { %v1563_v25 = vmax.f32 %v1560_v23, 0.0 }
 0x431   :  { %1944 = vmatmul.mubr.f32.vlgmr.msra.gmra.mrb[16].mxu1 %v1563_v25 }
 0x504   :  { %v1646_v30 = vpop.f32.mrb[16].mxu1 }
 0x505   :  { %v1650_v31 = vmax.f32 %v1646_v30, 0.0  ;;  %v1945_v32 = vpop.f32.mrb[17].mxu1 }
 0x507   :  { %1979 = vmatmul.mubr.f32.vlgmr.msra.gmra.mrb[20].mxu0 %v1650_v31 }
 0x5da   :  { %v1733_v6 = vpop.f32.mrb[20].mxu0 }
 0x5db   :  { %1737 = vst [vmem:[#allocation12] sm:$0x3] %v1733_v6  ;;  %v1980_v33 = vpop.f32.mrb[21].mxu0 }
 0x5dc   :  { %2608 = shalt.err (!%p2605_p8)
}
 0x5dd   :  { %s2609_s22 = scalar_lea.hbm %s3001_s6, 32 }
 0x5de   :  { %p2610_p9 = scmp.ne.s32.totalorder %s3001_s6, %s2609_s22  ;;  %p2613_p10 = scmp.lt.u32.totalorder %s2609_s22, %s3001_s6 }
 0x5e0   :  { %p2615_p11 = pnand %p2613_p10, %p2610_p9 }
 0x5e2   :  { %2618 = shalt.err (!%p2615_p11)
}
 0x5e3   :  { %1747 = dma.vmem_to_hbm [thread:$0]  %s1745_s3, 32, %s3001_s6, [#allocation6]  }
 0x5e4   :  { %2625 = dma.done.wait [#allocation6], 32  }
 0x5e5   :  { %2626 = vsyncadd [#allocation6], 4294967264 }
 0x5e6   :  { %1751 = vsyncpa [#allocation5], 1 }
 0x5e7   :  { %1752 = vsyncpa [#allocation8], 1 }
 0x5e8   :  { %1753 = vsyncpa [#allocation11], 1 }
 0x5e9   :  { %1754 = vsyncpa [#allocation6], 1 }

</bundles_post_ra>
